<compile_context>
chip_gen: v7x
topology: tpu7x:2x2x1
jax: 0.10.0
libtpu: 0.0.40
codegen_flags: <defaults>
</compile_context>

<pallas_src>
import jax
import jax.numpy as jnp
from jax.experimental import pallas as pl
from jax.experimental.pallas import tpu as pltpu

HID1 = 256
HID2 = 128


def _mlp_kernel(x_ref,
                w1_ref, b1_ref, s1_ref, t1_ref,
                wr1_ref, br1_ref,
                wr2_ref, br2_ref,
                w2_ref, b2_ref,
                w3_ref, b3_ref,
                o_ref):
    # Linear(D, 256) -> ReLU -> BatchNorm1d(256)   (bf16 MXU, f32 accumulate)
    x = x_ref[...].astype(jnp.bfloat16)
    h = jnp.dot(x, w1_ref[...], preferred_element_type=jnp.float32) + b1_ref[...]
    h = jnp.maximum(h, 0.0)
    h = h * s1_ref[...] + t1_ref[...]

    # ResidualBlock(256); both BNs folded into the Linears, Dropout(0.2)=identity.
    r = jnp.dot(h.astype(jnp.bfloat16), wr1_ref[...],
                preferred_element_type=jnp.float32) + br1_ref[...]
    r = jnp.maximum(r, 0.0)
    r = jnp.dot(r.astype(jnp.bfloat16), wr2_ref[...],
                preferred_element_type=jnp.float32) + br2_ref[...]
    h = jnp.maximum(r + h, 0.0)                  # relu(net(x) + x)

    # Dropout(0.3)=identity -> Linear(256, 128) -> ReLU
    h = jnp.dot(h.astype(jnp.bfloat16), w2_ref[...],
                preferred_element_type=jnp.float32) + b2_ref[...]
    h = jnp.maximum(h, 0.0)

    # Linear(128, 1), produced lane-dense: (1,128) @ (tile_n,128)^T -> (1, tile_n)
    # so the batch dimension lands along lanes and the store is an unmasked vst.
    y = jax.lax.dot_general(w3_ref[...], h.astype(jnp.bfloat16),
                            dimension_numbers=(((1,), (1,)), ((), ())),
                            preferred_element_type=jnp.float32)
    o_ref[...] = y + b3_ref[...]


def _fold_bn(gamma, beta, mean, var, eps=1e-5):
    scale = gamma / jnp.sqrt(var + eps)
    shift = beta - mean * scale
    return scale.reshape(1, -1), shift.reshape(1, -1)


def _round_up(n, m):
    return ((n + m - 1) // m) * m


def _prepare_params(p):
    """Fold residual-block BNs into their Linears; cast MXU weights to bf16."""
    wr1 = (p["wr1"] * p["sr1"]).astype(jnp.bfloat16)   # per-output-column scale
    br1 = p["br1"] * p["sr1"] + p["tr1"]
    wr2 = (p["wr2"] * p["sr2"]).astype(jnp.bfloat16)
    br2 = p["br2"] * p["sr2"] + p["tr2"]
    return dict(
        w1=p["w1"].astype(jnp.bfloat16), b1=p["b1"],
        s1=p["s1"], t1=p["t1"],
        wr1=wr1, br1=br1, wr2=wr2, br2=br2,
        w2=p["w2"].astype(jnp.bfloat16), b2=p["b2"],
        w3=p["w3"].reshape(1, HID2).astype(jnp.bfloat16),   # row vector for MXU
        b3=p["b3"].reshape(1, 1).astype(jnp.float32),
    )


def _chip_budget():
    """Return (max batch-tile rows, vmem_limit_bytes) for this TPU generation."""
    try:
        kind = jax.devices()[0].device_kind.lower()
    except Exception:
        kind = ""
    if "v5" in kind or "v6" in kind:
        return 4096, 96 * 1024 * 1024     # 128 MiB VMEM parts: go big
    return 2048, 48 * 1024 * 1024         # v7x (64 MiB VMEM) / unknown: conservative


def _choose_tiling(n, max_tile):
    """N-adaptive tiling: big tiles, minimal zero-row padding, even grid for v7x."""
    num_tiles = max(1, pl.cdiv(n, max_tile))
    if n >= 1024:                      # enough rows to feed both v7x TensorCores
        if num_tiles == 1:
            num_tiles = 2
        elif num_tiles % 2:
            num_tiles += 1
    if num_tiles == 1:
        tile_n = _round_up(n, 8)       # block == full array dims -> always legal
    else:
        tile_n = _round_up(pl.cdiv(n, num_tiles), 128)   # lane-dense (1,tile_n) out
    return num_tiles, tile_n


def fluid_loss_model_pallas(x, params):
    """x: (N, input_dim) float32 -> (N,) float32 (eval-mode forward)."""
    n, d = x.shape
    pp = _prepare_params(params)

    max_tile, vmem_limit = _chip_budget()
    num_tiles, tile_n = _choose_tiling(n, max_tile)
    n_pad = tile_n * num_tiles
    if n_pad != n:
        # Padded rows run on zeros and are sliced off below.
        x = jnp.pad(x, ((0, n_pad - n), (0, 0)))

    weights = (pp["w1"], pp["b1"], pp["s1"], pp["t1"],
               pp["wr1"], pp["br1"], pp["wr2"], pp["br2"],
               pp["w2"], pp["b2"], pp["w3"], pp["b3"])

    flops = 2 * n_pad * (d * HID1 + 2 * HID1 * HID1 + HID1 * HID2 + HID2)
    bytes_accessed = (n_pad * (d + 1) * 4
                      + sum(int(w.size) * w.dtype.itemsize for w in weights))

    def _run(single_buffer_weights):
        def const_map(ndim):
            return lambda i: (0,) * ndim

        weight_specs = []
        for w in weights:
            if single_buffer_weights:
                # Resident weights never re-fetch (constant index_map); one
                # buffer is enough -> VMEM headroom on v7x.
                spec = pl.BlockSpec(w.shape, const_map(w.ndim),
                                    pipeline_mode=pl.Buffered(1))
            else:
                spec = pl.BlockSpec(w.shape, const_map(w.ndim))
            weight_specs.append(spec)

        return pl.pallas_call(
            _mlp_kernel,
            out_shape=jax.ShapeDtypeStruct((1, n_pad), jnp.float32),
            grid=(num_tiles,),
            in_specs=[pl.BlockSpec((tile_n, d), lambda i: (i, 0))] + weight_specs,
            out_specs=pl.BlockSpec((1, tile_n), lambda i: (0, i)),   # lane-dense rows
            compiler_params=pltpu.CompilerParams(
                dimension_semantics=("parallel",),      # megacore sharding on v7x
                vmem_limit_bytes=vmem_limit),
            cost_estimate=pl.CostEstimate(
                flops=flops, transcendentals=0, bytes_accessed=bytes_accessed),
        )(x, *weights)

    if hasattr(pl, "Buffered"):
        try:
            out = _run(True)
        except Exception:          # pl.Buffered(1) unsupported on this jax version
            out = _run(False)
    else:
        out = _run(False)
    return out[0, :n]   # .squeeze(1)


def init_params(input_dim, key):
    ks = jax.random.split(key, 18)
    p = {}

    def lin(kw, kb, fan_in, fan_out):
        bound = 1.0 / jnp.sqrt(fan_in)
        w = jax.random.uniform(kw, (fan_in, fan_out), jnp.float32, -bound, bound)
        b = jax.random.uniform(kb, (1, fan_out), jnp.float32, -bound, bound)
        return w, b

    # Linear(input_dim, 256)
    p["w1"], p["b1"] = lin(ks[0], ks[1], input_dim, HID1)
    # BatchNorm1d(256) after first ReLU
    g1 = 1.0 + 0.1 * jax.random.normal(ks[2], (HID1,), jnp.float32)
    be1 = 0.1 * jax.random.normal(ks[3], (HID1,), jnp.float32)
    m1 = 0.05 * jax.random.normal(ks[4], (HID1,), jnp.float32)
    v1 = 1.0 + 0.1 * jnp.abs(jax.random.normal(ks[5], (HID1,), jnp.float32))
    p["s1"], p["t1"] = _fold_bn(g1, be1, m1, v1)

    # ResidualBlock: Linear + BN, Linear + BN
    p["wr1"], p["br1"] = lin(ks[6], ks[7], HID1, HID1)
    gr1 = 1.0 + 0.1 * jax.random.normal(ks[8], (HID1,), jnp.float32)
    ber1 = 0.1 * jax.random.normal(ks[9], (HID1,), jnp.float32)
    p["sr1"], p["tr1"] = _fold_bn(gr1, ber1, jnp.zeros((HID1,)), jnp.ones((HID1,)))

    p["wr2"], p["br2"] = lin(ks[10], ks[11], HID1, HID1)
    gr2 = 1.0 + 0.1 * jax.random.normal(ks[12], (HID1,), jnp.float32)
    ber2 = 0.1 * jax.random.normal(ks[13], (HID1,), jnp.float32)
    p["sr2"], p["tr2"] = _fold_bn(gr2, ber2, jnp.zeros((HID1,)), jnp.ones((HID1,)))

    # Linear(256, 128), Linear(128, 1)
    p["w2"], p["b2"] = lin(ks[14], ks[15], HID1, HID2)
    p["w3"], p["b3"] = lin(ks[16], ks[17], HID2, 1)
    return p


def reference_forward_bf16(x, p):
    """Pure-JAX reference with the kernel's exact numerics (bf16 MXU, f32 acc)."""
    pp = _prepare_params(p)

    def mm(a, w):
        return jnp.dot(a.astype(jnp.bfloat16), w, preferred_element_type=jnp.float32)

    h = jnp.maximum(mm(x, pp["w1"]) + pp["b1"], 0.0)
    h = h * pp["s1"] + pp["t1"]
    r = jnp.maximum(mm(h, pp["wr1"]) + pp["br1"], 0.0)
    r = mm(r, pp["wr2"]) + pp["br2"]
    h = jnp.maximum(r + h, 0.0)
    h = jnp.maximum(mm(h, pp["w2"]) + pp["b2"], 0.0)
    y = jax.lax.dot_general(pp["w3"], h.astype(jnp.bfloat16),
                            dimension_numbers=(((1,), (1,)), ((), ())),
                            preferred_element_type=jnp.float32) + pp["b3"]
    return y[0]


def reference_forward_f32(x, p):
    """Pure-f32 reference of the original eval-mode forward (no folding)."""
    h = jnp.maximum(x @ p["w1"] + p["b1"], 0.0)
    h = h * p["s1"] + p["t1"]
    r = (h @ p["wr1"] + p["br1"]) * p["sr1"] + p["tr1"]
    r = jnp.maximum(r, 0.0)
    r = (r @ p["wr2"] + p["br2"]) * p["sr2"] + p["tr2"]
    h = jnp.maximum(r + h, 0.0)
    h = jnp.maximum(h @ p["w2"] + p["b2"], 0.0)
    out = h @ p["w3"] + p["b3"]
    return out[:, 0]


if __name__ == "__main__":
    key = jax.random.PRNGKey(0)
    k_x, k_p = jax.random.split(key)

    batch = 8
    input_dim = 32
    x = jax.random.normal(k_x, (batch, input_dim), jnp.float32)
    params = init_params(input_dim, k_p)

    y = fluid_loss_model_pallas(x, params)
    y = jax.block_until_ready(y)
    assert y.shape == (batch,)

    # Exact-numerics check (same bf16-matmul / f32-accumulate recipe).
    y_bf16 = reference_forward_bf16(x, params)
    assert jnp.allclose(y, y_bf16, atol=2e-3, rtol=2e-3), (y, y_bf16)

    # Sanity check against the full-f32 original semantics (bf16 MXU error).
    y_f32 = reference_forward_f32(x, params)
    assert jnp.allclose(y, y_f32, atol=1e-1, rtol=1e-1), (y, y_f32)

    print("KERNEL_OK")
</pallas_src>

<mosaic_0001>
module attributes {stable_mosaic.version = 11 : i64} {
  func.func @_mlp_kernel(%arg0: i32, %arg1: memref<8x32xf32, #tpu.memory_space<vmem>>, %arg2: memref<32x256xbf16, #tpu.memory_space<vmem>>, %arg3: memref<1x256xf32, #tpu.memory_space<vmem>>, %arg4: memref<1x256xf32, #tpu.memory_space<vmem>>, %arg5: memref<1x256xf32, #tpu.memory_space<vmem>>, %arg6: memref<256x256xbf16, #tpu.memory_space<vmem>>, %arg7: memref<1x256xf32, #tpu.memory_space<vmem>>, %arg8: memref<256x256xbf16, #tpu.memory_space<vmem>>, %arg9: memref<1x256xf32, #tpu.memory_space<vmem>>, %arg10: memref<256x128xbf16, #tpu.memory_space<vmem>>, %arg11: memref<1x128xf32, #tpu.memory_space<vmem>>, %arg12: memref<1x128xbf16, #tpu.memory_space<vmem>>, %arg13: memref<1x1xf32, #tpu.memory_space<vmem>>, %arg14: memref<1x8xf32, #tpu.memory_space<vmem>>) attributes {dimension_semantics = [#tpu.dimension_semantics<parallel>], iteration_bounds = array<i64: 1>, scalar_prefetch = 0 : i64, scratch_operands = 0 : i64, tpu.core_type = #tpu.core_type<tc>, window_params = [{transform_indices = @transform_0, window_bounds = array<i64: 8, 32>}, {pipeline_mode = #tpu.pipeline_mode<synchronous>, transform_indices = @transform_1, window_bounds = array<i64: 32, 256>}, {pipeline_mode = #tpu.pipeline_mode<synchronous>, transform_indices = @transform_2, window_bounds = array<i64: 1, 256>}, {pipeline_mode = #tpu.pipeline_mode<synchronous>, transform_indices = @transform_3, window_bounds = array<i64: 1, 256>}, {pipeline_mode = #tpu.pipeline_mode<synchronous>, transform_indices = @transform_4, window_bounds = array<i64: 1, 256>}, {pipeline_mode = #tpu.pipeline_mode<synchronous>, transform_indices = @transform_5, window_bounds = array<i64: 256, 256>}, {pipeline_mode = #tpu.pipeline_mode<synchronous>, transform_indices = @transform_6, window_bounds = array<i64: 1, 256>}, {pipeline_mode = #tpu.pipeline_mode<synchronous>, transform_indices = @transform_7, window_bounds = array<i64: 256, 256>}, {pipeline_mode = #tpu.pipeline_mode<synchronous>, transform_indices = @transform_8, window_bounds = array<i64: 1, 256>}, {pipeline_mode = #tpu.pipeline_mode<synchronous>, transform_indices = @transform_9, window_bounds = array<i64: 256, 128>}, {pipeline_mode = #tpu.pipeline_mode<synchronous>, transform_indices = @transform_10, window_bounds = array<i64: 1, 128>}, {pipeline_mode = #tpu.pipeline_mode<synchronous>, transform_indices = @transform_11, window_bounds = array<i64: 1, 128>}, {pipeline_mode = #tpu.pipeline_mode<synchronous>, transform_indices = @transform_12, window_bounds = array<i64: 1, 1>}, {transform_indices = @transform_13, window_bounds = array<i64: 1, 8>}]} {
    %c0 = arith.constant 0 : index
    %c0_0 = arith.constant 0 : index
    %0 = vector.load %arg1[%c0, %c0_0] : memref<8x32xf32, #tpu.memory_space<vmem>>, vector<8x32xf32>
    %1 = arith.truncf %0 : vector<8x32xf32> to vector<8x32xbf16>
    %c0_1 = arith.constant 0 : index
    %c0_2 = arith.constant 0 : index
    %2 = vector.load %arg2[%c0_1, %c0_2] : memref<32x256xbf16, #tpu.memory_space<vmem>>, vector<32x256xbf16>
    %cst = arith.constant dense<0.000000e+00> : vector<8x256xf32>
    %3 = tpu.matmul %1, %2, %cst {dimension_numbers = #tpu.dot_dimension_numbers<[1], [0], [0], [1], [0, 0, 1, 1], [], []>} : vector<8x32xbf16>, vector<32x256xbf16>, vector<8x256xf32> -> vector<8x256xf32>
    %c0_3 = arith.constant 0 : index
    %c0_4 = arith.constant 0 : index
    %4 = vector.load %arg3[%c0_3, %c0_4] : memref<1x256xf32, #tpu.memory_space<vmem>>, vector<1x256xf32>
    %5 = vector.broadcast %4 : vector<1x256xf32> to vector<8x256xf32>
    %6 = arith.addf %3, %5 : vector<8x256xf32>
    %cst_5 = arith.constant 0.000000e+00 : f32
    %7 = vector.broadcast %cst_5 : f32 to vector<8x256xf32>
    %8 = arith.maximumf %6, %7 : vector<8x256xf32>
    %c0_6 = arith.constant 0 : index
    %c0_7 = arith.constant 0 : index
    %9 = vector.load %arg4[%c0_6, %c0_7] : memref<1x256xf32, #tpu.memory_space<vmem>>, vector<1x256xf32>
    %10 = vector.broadcast %9 : vector<1x256xf32> to vector<8x256xf32>
    %11 = arith.mulf %8, %10 : vector<8x256xf32>
    %c0_8 = arith.constant 0 : index
    %c0_9 = arith.constant 0 : index
    %12 = vector.load %arg5[%c0_8, %c0_9] : memref<1x256xf32, #tpu.memory_space<vmem>>, vector<1x256xf32>
    %13 = vector.broadcast %12 : vector<1x256xf32> to vector<8x256xf32>
    %14 = arith.addf %11, %13 : vector<8x256xf32>
    %15 = arith.truncf %14 : vector<8x256xf32> to vector<8x256xbf16>
    %c0_10 = arith.constant 0 : index
    %c0_11 = arith.constant 0 : index
    %16 = vector.load %arg6[%c0_10, %c0_11] : memref<256x256xbf16, #tpu.memory_space<vmem>>, vector<256x256xbf16>
    %cst_12 = arith.constant dense<0.000000e+00> : vector<8x256xf32>
    %17 = tpu.matmul %15, %16, %cst_12 {dimension_numbers = #tpu.dot_dimension_numbers<[1], [0], [0], [1], [0, 0, 1, 1], [], []>} : vector<8x256xbf16>, vector<256x256xbf16>, vector<8x256xf32> -> vector<8x256xf32>
    %c0_13 = arith.constant 0 : index
    %c0_14 = arith.constant 0 : index
    %18 = vector.load %arg7[%c0_13, %c0_14] : memref<1x256xf32, #tpu.memory_space<vmem>>, vector<1x256xf32>
    %19 = vector.broadcast %18 : vector<1x256xf32> to vector<8x256xf32>
    %20 = arith.addf %17, %19 : vector<8x256xf32>
    %cst_15 = arith.constant 0.000000e+00 : f32
    %21 = vector.broadcast %cst_15 : f32 to vector<8x256xf32>
    %22 = arith.maximumf %20, %21 : vector<8x256xf32>
    %23 = arith.truncf %22 : vector<8x256xf32> to vector<8x256xbf16>
    %c0_16 = arith.constant 0 : index
    %c0_17 = arith.constant 0 : index
    %24 = vector.load %arg8[%c0_16, %c0_17] : memref<256x256xbf16, #tpu.memory_space<vmem>>, vector<256x256xbf16>
    %cst_18 = arith.constant dense<0.000000e+00> : vector<8x256xf32>
    %25 = tpu.matmul %23, %24, %cst_18 {dimension_numbers = #tpu.dot_dimension_numbers<[1], [0], [0], [1], [0, 0, 1, 1], [], []>} : vector<8x256xbf16>, vector<256x256xbf16>, vector<8x256xf32> -> vector<8x256xf32>
    %c0_19 = arith.constant 0 : index
    %c0_20 = arith.constant 0 : index
    %26 = vector.load %arg9[%c0_19, %c0_20] : memref<1x256xf32, #tpu.memory_space<vmem>>, vector<1x256xf32>
    %27 = vector.broadcast %26 : vector<1x256xf32> to vector<8x256xf32>
    %28 = arith.addf %25, %27 : vector<8x256xf32>
    %29 = arith.addf %28, %14 : vector<8x256xf32>
    %cst_21 = arith.constant 0.000000e+00 : f32
    %30 = vector.broadcast %cst_21 : f32 to vector<8x256xf32>
    %31 = arith.maximumf %29, %30 : vector<8x256xf32>
    %32 = arith.truncf %31 : vector<8x256xf32> to vector<8x256xbf16>
    %c0_22 = arith.constant 0 : index
    %c0_23 = arith.constant 0 : index
    %33 = vector.load %arg10[%c0_22, %c0_23] : memref<256x128xbf16, #tpu.memory_space<vmem>>, vector<256x128xbf16>
    %cst_24 = arith.constant dense<0.000000e+00> : vector<8x128xf32>
    %34 = tpu.matmul %32, %33, %cst_24 {dimension_numbers = #tpu.dot_dimension_numbers<[1], [0], [0], [1], [0, 0, 1, 1], [], []>} : vector<8x256xbf16>, vector<256x128xbf16>, vector<8x128xf32> -> vector<8x128xf32>
    %c0_25 = arith.constant 0 : index
    %c0_26 = arith.constant 0 : index
    %35 = vector.load %arg11[%c0_25, %c0_26] : memref<1x128xf32, #tpu.memory_space<vmem>>, vector<1x128xf32>
    %36 = vector.broadcast %35 : vector<1x128xf32> to vector<8x128xf32>
    %37 = arith.addf %34, %36 : vector<8x128xf32>
    %cst_27 = arith.constant 0.000000e+00 : f32
    %38 = vector.broadcast %cst_27 : f32 to vector<8x128xf32>
    %39 = arith.maximumf %37, %38 : vector<8x128xf32>
    %c0_28 = arith.constant 0 : index
    %c0_29 = arith.constant 0 : index
    %40 = vector.load %arg12[%c0_28, %c0_29] : memref<1x128xbf16, #tpu.memory_space<vmem>>, vector<1x128xbf16>
    %41 = arith.truncf %39 : vector<8x128xf32> to vector<8x128xbf16>
    %cst_30 = arith.constant dense<0.000000e+00> : vector<1x8xf32>
    %42 = tpu.matmul %40, %41, %cst_30 {dimension_numbers = #tpu.dot_dimension_numbers<[1], [1], [0], [0], [0, 0, 1, 0], [], []>} : vector<1x128xbf16>, vector<8x128xbf16>, vector<1x8xf32> -> vector<1x8xf32>
    %c0_31 = arith.constant 0 : index
    %c0_32 = arith.constant 0 : index
    %43 = vector.load %arg13[%c0_31, %c0_32] : memref<1x1xf32, #tpu.memory_space<vmem>>, vector<1x1xf32>
    %44 = vector.broadcast %43 : vector<1x1xf32> to vector<1x8xf32>
    %45 = arith.addf %42, %44 : vector<1x8xf32>
    %c0_33 = arith.constant 0 : index
    %c0_34 = arith.constant 0 : index
    %46 = vector.load %arg14[%c0_33, %c0_34] : memref<1x8xf32, #tpu.memory_space<vmem>>, vector<1x8xf32>
    tpu.vector_store %arg14[%c0_33, %c0_34], %45 {strides = array<i32>} : memref<1x8xf32, #tpu.memory_space<vmem>>, vector<1x8xf32>,
    return
  }
  func.func @transform_0(%arg0: i32) -> (i32, i32) {
    %c0_i32 = arith.constant 0 : i32
    %c0_i32_0 = arith.constant 0 : i32
    return %arg0, %c0_i32 : i32, i32
  }
  func.func @transform_1(%arg0: i32) -> (i32, i32) {
    %c0_i32 = arith.constant 0 : i32
    %c0_i32_0 = arith.constant 0 : i32
    %c0_i32_1 = arith.constant 0 : i32
    return %c0_i32, %c0_i32_0 : i32, i32
  }
  func.func @transform_2(%arg0: i32) -> (i32, i32) {
    %c0_i32 = arith.constant 0 : i32
    %c0_i32_0 = arith.constant 0 : i32
    %c0_i32_1 = arith.constant 0 : i32
    return %c0_i32, %c0_i32_0 : i32, i32
  }
  func.func @transform_3(%arg0: i32) -> (i32, i32) {
    %c0_i32 = arith.constant 0 : i32
    %c0_i32_0 = arith.constant 0 : i32
    %c0_i32_1 = arith.constant 0 : i32
    return %c0_i32, %c0_i32_0 : i32, i32
  }
  func.func @transform_4(%arg0: i32) -> (i32, i32) {
    %c0_i32 = arith.constant 0 : i32
    %c0_i32_0 = arith.constant 0 : i32
    %c0_i32_1 = arith.constant 0 : i32
    return %c0_i32, %c0_i32_0 : i32, i32
  }
  func.func @transform_5(%arg0: i32) -> (i32, i32) {
    %c0_i32 = arith.constant 0 : i32
    %c0_i32_0 = arith.constant 0 : i32
    %c0_i32_1 = arith.constant 0 : i32
    return %c0_i32, %c0_i32_0 : i32, i32
  }
  func.func @transform_6(%arg0: i32) -> (i32, i32) {
    %c0_i32 = arith.constant 0 : i32
    %c0_i32_0 = arith.constant 0 : i32
    %c0_i32_1 = arith.constant 0 : i32
    return %c0_i32, %c0_i32_0 : i32, i32
  }
  func.func @transform_7(%arg0: i32) -> (i32, i32) {
    %c0_i32 = arith.constant 0 : i32
    %c0_i32_0 = arith.constant 0 : i32
    %c0_i32_1 = arith.constant 0 : i32
    return %c0_i32, %c0_i32_0 : i32, i32
  }
  func.func @transform_8(%arg0: i32) -> (i32, i32) {
    %c0_i32 = arith.constant 0 : i32
    %c0_i32_0 = arith.constant 0 : i32
    %c0_i32_1 = arith.constant 0 : i32
    return %c0_i32, %c0_i32_0 : i32, i32
  }
  func.func @transform_9(%arg0: i32) -> (i32, i32) {
    %c0_i32 = arith.constant 0 : i32
    %c0_i32_0 = arith.constant 0 : i32
    %c0_i32_1 = arith.constant 0 : i32
    return %c0_i32, %c0_i32_0 : i32, i32
  }
  func.func @transform_10(%arg0: i32) -> (i32, i32) {
    %c0_i32 = arith.constant 0 : i32
    %c0_i32_0 = arith.constant 0 : i32
    %c0_i32_1 = arith.constant 0 : i32
    return %c0_i32, %c0_i32_0 : i32, i32
  }
  func.func @transform_11(%arg0: i32) -> (i32, i32) {
    %c0_i32 = arith.constant 0 : i32
    %c0_i32_0 = arith.constant 0 : i32
    %c0_i32_1 = arith.constant 0 : i32
    return %c0_i32, %c0_i32_0 : i32, i32
  }
  func.func @transform_12(%arg0: i32) -> (i32, i32) {
    %c0_i32 = arith.constant 0 : i32
    %c0_i32_0 = arith.constant 0 : i32
    %c0_i32_1 = arith.constant 0 : i32
    return %c0_i32, %c0_i32_0 : i32, i32
  }
  func.func @transform_13(%arg0: i32) -> (i32, i32) {
    %c0_i32 = arith.constant 0 : i32
    %c0_i32_0 = arith.constant 0 : i32
    return %c0_i32, %arg0 : i32, i32
  }
}

module attributes {stable_mosaic.version = 11 : i64} {
  func.func @_mlp_kernel(%arg0: i32, %arg1: memref<8x32xf32, #tpu.memory_space<vmem>>, %arg2: memref<32x256xbf16, #tpu.memory_space<vmem>>, %arg3: memref<1x256xf32, #tpu.memory_space<vmem>>, %arg4: memref<1x256xf32, #tpu.memory_space<vmem>>, %arg5: memref<1x256xf32, #tpu.memory_space<vmem>>, %arg6: memref<256x256xbf16, #tpu.memory_space<vmem>>, %arg7: memref<1x256xf32, #tpu.memory_space<vmem>>, %arg8: memref<256x256xbf16, #tpu.memory_space<vmem>>, %arg9: memref<1x256xf32, #tpu.memory_space<vmem>>, %arg10: memref<256x128xbf16, #tpu.memory_space<vmem>>, %arg11: memref<1x128xf32, #tpu.memory_space<vmem>>, %arg12: memref<1x128xbf16, #tpu.memory_space<vmem>>, %arg13: memref<1x1xf32, #tpu.memory_space<vmem>>, %arg14: memref<1x8xf32, #tpu.memory_space<vmem>>) attributes {dimension_semantics = [#tpu.dimension_semantics<parallel>], iteration_bounds = array<i64: 1>, scalar_prefetch = 0 : i64, scratch_operands = 0 : i64, tpu.core_type = #tpu.core_type<tc>, window_params = [{transform_indices = @transform_0, window_bounds = array<i64: 8, 32>}, {pipeline_mode = #tpu.pipeline_mode<synchronous>, transform_indices = @transform_1, window_bounds = array<i64: 32, 256>}, {pipeline_mode = #tpu.pipeline_mode<synchronous>, transform_indices = @transform_2, window_bounds = array<i64: 1, 256>}, {pipeline_mode = #tpu.pipeline_mode<synchronous>, transform_indices = @transform_3, window_bounds = array<i64: 1, 256>}, {pipeline_mode = #tpu.pipeline_mode<synchronous>, transform_indices = @transform_4, window_bounds = array<i64: 1, 256>}, {pipeline_mode = #tpu.pipeline_mode<synchronous>, transform_indices = @transform_5, window_bounds = array<i64: 256, 256>}, {pipeline_mode = #tpu.pipeline_mode<synchronous>, transform_indices = @transform_6, window_bounds = array<i64: 1, 256>}, {pipeline_mode = #tpu.pipeline_mode<synchronous>, transform_indices = @transform_7, window_bounds = array<i64: 256, 256>}, {pipeline_mode = #tpu.pipeline_mode<synchronous>, transform_indices = @transform_8, window_bounds = array<i64: 1, 256>}, {pipeline_mode = #tpu.pipeline_mode<synchronous>, transform_indices = @transform_9, window_bounds = array<i64: 256, 128>}, {pipeline_mode = #tpu.pipeline_mode<synchronous>, transform_indices = @transform_10, window_bounds = array<i64: 1, 128>}, {pipeline_mode = #tpu.pipeline_mode<synchronous>, transform_indices = @transform_11, window_bounds = array<i64: 1, 128>}, {pipeline_mode = #tpu.pipeline_mode<synchronous>, transform_indices = @transform_12, window_bounds = array<i64: 1, 1>}, {transform_indices = @transform_13, window_bounds = array<i64: 1, 8>}]} {
    %c0 = arith.constant 0 : index
    %c0_0 = arith.constant 0 : index
    %0 = vector.load %arg1[%c0, %c0_0] : memref<8x32xf32, #tpu.memory_space<vmem>>, vector<8x32xf32>
    %1 = arith.truncf %0 : vector<8x32xf32> to vector<8x32xbf16>
    %c0_1 = arith.constant 0 : index
    %c0_2 = arith.constant 0 : index
    %2 = vector.load %arg2[%c0_1, %c0_2] : memref<32x256xbf16, #tpu.memory_space<vmem>>, vector<32x256xbf16>
    %cst = arith.constant dense<0.000000e+00> : vector<8x256xf32>
    %3 = tpu.matmul %1, %2, %cst {dimension_numbers = #tpu.dot_dimension_numbers<[1], [0], [0], [1], [0, 0, 1, 1], [], []>} : vector<8x32xbf16>, vector<32x256xbf16>, vector<8x256xf32> -> vector<8x256xf32>
    %c0_3 = arith.constant 0 : index
    %c0_4 = arith.constant 0 : index
    %4 = vector.load %arg3[%c0_3, %c0_4] : memref<1x256xf32, #tpu.memory_space<vmem>>, vector<1x256xf32>
    %5 = vector.broadcast %4 : vector<1x256xf32> to vector<8x256xf32>
    %6 = arith.addf %3, %5 : vector<8x256xf32>
    %cst_5 = arith.constant 0.000000e+00 : f32
    %7 = vector.broadcast %cst_5 : f32 to vector<8x256xf32>
    %8 = arith.maximumf %6, %7 : vector<8x256xf32>
    %c0_6 = arith.constant 0 : index
    %c0_7 = arith.constant 0 : index
    %9 = vector.load %arg4[%c0_6, %c0_7] : memref<1x256xf32, #tpu.memory_space<vmem>>, vector<1x256xf32>
    %10 = vector.broadcast %9 : vector<1x256xf32> to vector<8x256xf32>
    %11 = arith.mulf %8, %10 : vector<8x256xf32>
    %c0_8 = arith.constant 0 : index
    %c0_9 = arith.constant 0 : index
    %12 = vector.load %arg5[%c0_8, %c0_9] : memref<1x256xf32, #tpu.memory_space<vmem>>, vector<1x256xf32>
    %13 = vector.broadcast %12 : vector<1x256xf32> to vector<8x256xf32>
    %14 = arith.addf %11, %13 : vector<8x256xf32>
    %15 = arith.truncf %14 : vector<8x256xf32> to vector<8x256xbf16>
    %c0_10 = arith.constant 0 : index
    %c0_11 = arith.constant 0 : index
    %16 = vector.load %arg6[%c0_10, %c0_11] : memref<256x256xbf16, #tpu.memory_space<vmem>>, vector<256x256xbf16>
    %cst_12 = arith.constant dense<0.000000e+00> : vector<8x256xf32>
    %17 = tpu.matmul %15, %16, %cst_12 {dimension_numbers = #tpu.dot_dimension_numbers<[1], [0], [0], [1], [0, 0, 1, 1], [], []>} : vector<8x256xbf16>, vector<256x256xbf16>, vector<8x256xf32> -> vector<8x256xf32>
    %c0_13 = arith.constant 0 : index
    %c0_14 = arith.constant 0 : index
    %18 = vector.load %arg7[%c0_13, %c0_14] : memref<1x256xf32, #tpu.memory_space<vmem>>, vector<1x256xf32>
    %19 = vector.broadcast %18 : vector<1x256xf32> to vector<8x256xf32>
    %20 = arith.addf %17, %19 : vector<8x256xf32>
    %cst_15 = arith.constant 0.000000e+00 : f32
    %21 = vector.broadcast %cst_15 : f32 to vector<8x256xf32>
    %22 = arith.maximumf %20, %21 : vector<8x256xf32>
    %23 = arith.truncf %22 : vector<8x256xf32> to vector<8x256xbf16>
    %c0_16 = arith.constant 0 : index
    %c0_17 = arith.constant 0 : index
    %24 = vector.load %arg8[%c0_16, %c0_17] : memref<256x256xbf16, #tpu.memory_space<vmem>>, vector<256x256xbf16>
    %cst_18 = arith.constant dense<0.000000e+00> : vector<8x256xf32>
    %25 = tpu.matmul %23, %24, %cst_18 {dimension_numbers = #tpu.dot_dimension_numbers<[1], [0], [0], [1], [0, 0, 1, 1], [], []>} : vector<8x256xbf16>, vector<256x256xbf16>, vector<8x256xf32> -> vector<8x256xf32>
    %c0_19 = arith.constant 0 : index
    %c0_20 = arith.constant 0 : index
    %26 = vector.load %arg9[%c0_19, %c0_20] : memref<1x256xf32, #tpu.memory_space<vmem>>, vector<1x256xf32>
    %27 = vector.broadcast %26 : vector<1x256xf32> to vector<8x256xf32>
    %28 = arith.addf %25, %27 : vector<8x256xf32>
    %29 = arith.addf %28, %14 : vector<8x256xf32>
    %cst_21 = arith.constant 0.000000e+00 : f32
    %30 = vector.broadcast %cst_21 : f32 to vector<8x256xf32>
    %31 = arith.maximumf %29, %30 : vector<8x256xf32>
    %32 = arith.truncf %31 : vector<8x256xf32> to vector<8x256xbf16>
    %c0_22 = arith.constant 0 : index
    %c0_23 = arith.constant 0 : index
    %33 = vector.load %arg10[%c0_22, %c0_23] : memref<256x128xbf16, #tpu.memory_space<vmem>>, vector<256x128xbf16>
    %cst_24 = arith.constant dense<0.000000e+00> : vector<8x128xf32>
    %34 = tpu.matmul %32, %33, %cst_24 {dimension_numbers = #tpu.dot_dimension_numbers<[1], [0], [0], [1], [0, 0, 1, 1], [], []>} : vector<8x256xbf16>, vector<256x128xbf16>, vector<8x128xf32> -> vector<8x128xf32>
    %c0_25 = arith.constant 0 : index
    %c0_26 = arith.constant 0 : index
    %35 = vector.load %arg11[%c0_25, %c0_26] : memref<1x128xf32, #tpu.memory_space<vmem>>, vector<1x128xf32>
    %36 = vector.broadcast %35 : vector<1x128xf32> to vector<8x128xf32>
    %37 = arith.addf %34, %36 : vector<8x128xf32>
    %cst_27 = arith.constant 0.000000e+00 : f32
    %38 = vector.broadcast %cst_27 : f32 to vector<8x128xf32>
    %39 = arith.maximumf %37, %38 : vector<8x128xf32>
    %c0_28 = arith.constant 0 : index
    %c0_29 = arith.constant 0 : index
    %40 = vector.load %arg12[%c0_28, %c0_29] : memref<1x128xbf16, #tpu.memory_space<vmem>>, vector<1x128xbf16>
    %41 = arith.truncf %39 : vector<8x128xf32> to vector<8x128xbf16>
    %cst_30 = arith.constant dense<0.000000e+00> : vector<1x8xf32>
    %42 = tpu.matmul %40, %41, %cst_30 {dimension_numbers = #tpu.dot_dimension_numbers<[1], [1], [0], [0], [0, 0, 1, 0], [], []>} : vector<1x128xbf16>, vector<8x128xbf16>, vector<1x8xf32> -> vector<1x8xf32>
    %c0_31 = arith.constant 0 : index
    %c0_32 = arith.constant 0 : index
    %43 = vector.load %arg13[%c0_31, %c0_32] : memref<1x1xf32, #tpu.memory_space<vmem>>, vector<1x1xf32>
    %44 = vector.broadcast %43 : vector<1x1xf32> to vector<1x8xf32>
    %45 = arith.addf %42, %44 : vector<1x8xf32>
    %c0_33 = arith.constant 0 : index
    %c0_34 = arith.constant 0 : index
    %46 = vector.load %arg14[%c0_33, %c0_34] : memref<1x8xf32, #tpu.memory_space<vmem>>, vector<1x8xf32>
    tpu.vector_store %arg14[%c0_33, %c0_34], %45 {strides = array<i32>} : memref<1x8xf32, #tpu.memory_space<vmem>>, vector<1x8xf32>,
    return
  }
  func.func @transform_0(%arg0: i32) -> (i32, i32) {
    %c0_i32 = arith.constant 0 : i32
    %c0_i32_0 = arith.constant 0 : i32
    return %arg0, %c0_i32 : i32, i32
  }
  func.func @transform_1(%arg0: i32) -> (i32, i32) {
    %c0_i32 = arith.constant 0 : i32
    %c0_i32_0 = arith.constant 0 : i32
    %c0_i32_1 = arith.constant 0 : i32
    return %c0_i32, %c0_i32_0 : i32, i32
  }
  func.func @transform_2(%arg0: i32) -> (i32, i32) {
    %c0_i32 = arith.constant 0 : i32
    %c0_i32_0 = arith.constant 0 : i32
    %c0_i32_1 = arith.constant 0 : i32
    return %c0_i32, %c0_i32_0 : i32, i32
  }
  func.func @transform_3(%arg0: i32) -> (i32, i32) {
    %c0_i32 = arith.constant 0 : i32
    %c0_i32_0 = arith.constant 0 : i32
    %c0_i32_1 = arith.constant 0 : i32
    return %c0_i32, %c0_i32_0 : i32, i32
  }
  func.func @transform_4(%arg0: i32) -> (i32, i32) {
    %c0_i32 = arith.constant 0 : i32
    %c0_i32_0 = arith.constant 0 : i32
    %c0_i32_1 = arith.constant 0 : i32
    return %c0_i32, %c0_i32_0 : i32, i32
  }
  func.func @transform_5(%arg0: i32) -> (i32, i32) {
    %c0_i32 = arith.constant 0 : i32
    %c0_i32_0 = arith.constant 0 : i32
    %c0_i32_1 = arith.constant 0 : i32
    return %c0_i32, %c0_i32_0 : i32, i32
  }
  func.func @transform_6(%arg0: i32) -> (i32, i32) {
    %c0_i32 = arith.constant 0 : i32
    %c0_i32_0 = arith.constant 0 : i32
    %c0_i32_1 = arith.constant 0 : i32
    return %c0_i32, %c0_i32_0 : i32, i32
  }
  func.func @transform_7(%arg0: i32) -> (i32, i32) {
    %c0_i32 = arith.constant 0 : i32
    %c0_i32_0 = arith.constant 0 : i32
    %c0_i32_1 = arith.constant 0 : i32
    return %c0_i32, %c0_i32_0 : i32, i32
  }
  func.func @transform_8(%arg0: i32) -> (i32, i32) {
    %c0_i32 = arith.constant 0 : i32
    %c0_i32_0 = arith.constant 0 : i32
    %c0_i32_1 = arith.constant 0 : i32
    return %c0_i32, %c0_i32_0 : i32, i32
  }
  func.func @transform_9(%arg0: i32) -> (i32, i32) {
    %c0_i32 = arith.constant 0 : i32
    %c0_i32_0 = arith.constant 0 : i32
    %c0_i32_1 = arith.constant 0 : i32
    return %c0_i32, %c0_i32_0 : i32, i32
  }
  func.func @transform_10(%arg0: i32) -> (i32, i32) {
    %c0_i32 = arith.constant 0 : i32
    %c0_i32_0 = arith.constant 0 : i32
    %c0_i32_1 = arith.constant 0 : i32
    return %c0_i32, %c0_i32_0 : i32, i32
  }
  func.func @transform_11(%arg0: i32) -> (i32, i32) {
    %c0_i32 = arith.constant 0 : i32
    %c0_i32_0 = arith.constant 0 : i32
    %c0_i32_1 = arith.constant 0 : i32
    return %c0_i32, %c0_i32_0 : i32, i32
  }
  func.func @transform_12(%arg0: i32) -> (i32, i32) {
    %c0_i32 = arith.constant 0 : i32
    %c0_i32_0 = arith.constant 0 : i32
    %c0_i32_1 = arith.constant 0 : i32
    return %c0_i32, %c0_i32_0 : i32, i32
  }
  func.func @transform_13(%arg0: i32) -> (i32, i32) {
    %c0_i32 = arith.constant 0 : i32
    %c0_i32_0 = arith.constant 0 : i32
    return %c0_i32, %arg0 : i32, i32
  }
}

</mosaic_0001>

<bundles_post_ra>
// kernel: tpu_custom_call.1
= control target key start
LH: loop header
LB: loop body
LE: loop exit
PB: predicated region body
PF: predicated region fallthrough
CT: control target
= control target key end

     0   :  { %s1577_s0 = inlined_call_operand.hbm [shape: f32[8,32], index: 0, kind: input, shape index: {}]   ;;  %s1578_s1 = inlined_call_operand.hbm [shape: bf16[32,256], index: 1, kind: input, shape index: {}]   ;;  %s1579_s2 = inlined_call_operand.vmem [shape: f32[1,256], index: 2, kind: input, shape index: {}]   ;;  %s1580_s3 = inlined_call_operand.vmem [shape: f32[1,256], index: 3, kind: input, shape index: {}]   ;;  %s1581_s4 = inlined_call_operand.vmem [shape: f32[1,256], index: 4, kind: input, shape index: {}]   ;;  %s1582_s5 = inlined_call_operand.hbm [shape: bf16[256,256], index: 5, kind: input, shape index: {}]   ;;  %s1583_s6 = inlined_call_operand.vmem [shape: f32[1,256], index: 6, kind: input, shape index: {}]   ;;  %s1584_s7 = inlined_call_operand.hbm [shape: bf16[256,256], index: 7, kind: input, shape index: {}]   ;;  %s1585_s8 = inlined_call_operand.vmem [shape: f32[1,256], index: 8, kind: input, shape index: {}]   ;;  %s1586_s9 = inlined_call_operand.hbm [shape: bf16[256,128], index: 9, kind: input, shape index: {}]   ;;  %s1587_s10 = inlined_call_operand.vmem [shape: f32[1,128], index: 10, kind: input, shape index: {}]   ;;  %s1588_s11 = inlined_call_operand.vmem [shape: bf16[1,128], index: 11, kind: input, shape index: {}]   ;;  %s1589_s12 = inlined_call_operand.<no memory space> [shape: f32[1,1], index: 12, kind: input, shape index: {}]   ;;  %s1590_s13 = inlined_call_operand.hbm [shape: f32[1,8], index: 13, kind: output, shape index: {}]  }
   0x1   :  { %v18_v0 = vstv %s1589_s12 }
   0x2   :  { %19 = vst [vmem:[#allocation2] sm:$0x1] %v18_v0 }
   0x3   :  { %20 = vsyncpa [#allocation4], 0 }
   0x4   :  { %21 = vsyncpa [#allocation7], 0 }
   0x5   :  { %22 = vsyncpa [#allocation10], 0 }
   0x6   :  { %23 = vsyncpa [#allocation5], 0  ;;  %s1364_s27 = smov [#allocation6]   ;;  %s1224_s14 = scalar_lea.hbm %s1578_s1, 512 }
   0x7   :  { %s39_s28 = sshll.u32 %s1364_s27, 4  ;;  %p1225_p0 = scmp.ne.s32.totalorder %s1578_s1, %s1224_s14  ;;  %s40_s28 = int_to_ptr.vmem [resolvable:$true] %s39_s28 }
   0x8   :  { %p1228_p1 = scmp.lt.u32.totalorder %s1224_s14, %s1578_s1 }
   0xa   :  { %p1230_p2 = pnand %p1228_p1, %p1225_p0 }
   0xc   :  { %1233 = shalt.err (!%p1230_p2)
}
   0xd   :  { %s1234_s12 = scalar_lea.vmem %s40_s28, 512  ;;  %p1239_p4 = scmp.lt.s32.totalorder %s40_s28, %s40_s28 }
   0xe   :  { %p1235_p3 = scmp.ne.s32.totalorder %s40_s28, %s1234_s12  ;;  %p1240_p5 = scmp.lt.s32.totalorder %s1234_s12, %s1234_s12 }
  0x10   :  { %p1241_p6 = por %p1240_p5, %p1239_p4 }
  0x12   :  { %p1242_p7 = pnand %p1241_p6, %p1235_p3 }
  0x14   :  { %1245 = shalt.err (!%p1242_p7)
}
  0x15   :  { %s1365_s19 = smov 128   ;;  %s1366_s20 = smov 8  }
  0x16   :  { %45 = dma.hbm_to_vmem [thread:$0]  %s1578_s1, 512, %s40_s28, [#allocation7], %s1365_s19, %s1365_s19, %s1366_s20  }
  0x17   :  { %s1367_s23 = smov [#allocation9]   ;;  %s1368_s25 = smov [#allocation3]  }
  0x18   :  { %s71_s24 = sshll.u32 %s1367_s23, 4  ;;  %s30_s26 = sshll.u32 %s1368_s25, 4  ;;  %s72_s24 = int_to_ptr.vmem [resolvable:$true] %s71_s24  ;;  %s31_s26 = int_to_ptr.vmem [resolvable:$true] %s30_s26 }
  0x19   :  { %s1246_s30 = scalar_lea.hbm %s1584_s7, 4096 }
  0x1a   :  { %p1247_p8 = scmp.ne.s32.totalorder %s1584_s7, %s1246_s30  ;;  %p1250_p9 = scmp.lt.u32.totalorder %s1246_s30, %s1584_s7 }
  0x1c   :  { %p1252_p10 = pnand %p1250_p9, %p1247_p8 }
  0x1e   :  { %1255 = shalt.err (!%p1252_p10)
}
  0x1f   :  { %s1256_s1 = scalar_lea.vmem %s72_s24, 4096  ;;  %p1261_p12 = scmp.lt.s32.totalorder %s72_s24, %s72_s24 }
  0x20   :  { %p1257_p11 = scmp.ne.s32.totalorder %s72_s24, %s1256_s1  ;;  %p1262_p13 = scmp.lt.s32.totalorder %s1256_s1, %s1256_s1 }
  0x22   :  { %p1263_p0 = por %p1262_p13, %p1261_p12 }
  0x24   :  { %p1264_p1 = pnand %p1263_p0, %p1257_p11 }
  0x26   :  { %1267 = shalt.err (!%p1264_p1)
}
  0x27   :  { %77 = dma.hbm_to_vmem [thread:$0]  %s1584_s7, 4096, %s72_s24, [#allocation10], %s1365_s19, %s1365_s19, %s1366_s20  }
  0x28   :  { %s1268_s22 = scalar_lea.hbm %s1577_s0, 128 }
  0x29   :  { %p1269_p2 = scmp.ne.s32.totalorder %s1577_s0, %s1268_s22  ;;  %p1272_p3 = scmp.lt.u32.totalorder %s1268_s22, %s1577_s0 }
  0x2b   :  { %p1274_p4 = pnand %p1272_p3, %p1269_p2 }
  0x2d   :  { %1277 = shalt.err (!%p1274_p4)
}
  0x2e   :  { %s1278_s30 = scalar_lea.vmem %s31_s26, 128  ;;  %p1283_p6 = scmp.lt.s32.totalorder %s31_s26, %s31_s26 }
  0x2f   :  { %p1279_p5 = scmp.ne.s32.totalorder %s31_s26, %s1278_s30  ;;  %p1284_p7 = scmp.lt.s32.totalorder %s1278_s30, %s1278_s30 }
  0x31   :  { %p1285_p8 = por %p1284_p7, %p1283_p6 }
  0x33   :  { %p1286_p9 = pnand %p1285_p8, %p1279_p5 }
  0x35   :  { %1289 = shalt.err (!%p1286_p9)
}
  0x36   :  { %33 = dma.hbm_to_vmem [thread:$0]  %s1577_s0, 128, %s31_s26, [#allocation4]  }
  0x37   :  { %s1369_s14 = smov [#allocation8]   ;;  %s1370_s16 = smov [#allocation11]  }
  0x38   :  { %s57_s15 = sshll.u32 %s1369_s14, 4  ;;  %s85_s17 = sshll.u32 %s1370_s16, 4  ;;  %s58_s15 = int_to_ptr.vmem [resolvable:$true] %s57_s15  ;;  %s86_s17 = int_to_ptr.vmem [resolvable:$true] %s85_s17 }
  0x39   :  { %s1290_s18 = scalar_lea.hbm %s1582_s5, 4096 }
  0x3a   :  { %p1291_p10 = scmp.ne.s32.totalorder %s1582_s5, %s1290_s18  ;;  %p1294_p11 = scmp.lt.u32.totalorder %s1290_s18, %s1582_s5 }
  0x3c   :  { %p1296_p12 = pnand %p1294_p11, %p1291_p10 }
  0x3e   :  { %1299 = shalt.err (!%p1296_p12)
}
  0x3f   :  { %s1300_s0 = scalar_lea.vmem %s58_s15, 4096  ;;  %p1305_p0 = scmp.lt.s32.totalorder %s58_s15, %s58_s15 }
  0x40   :  { %p1301_p13 = scmp.ne.s32.totalorder %s58_s15, %s1300_s0  ;;  %p1306_p1 = scmp.lt.s32.totalorder %s1300_s0, %s1300_s0 }
  0x42   :  { %p1307_p2 = por %p1306_p1, %p1305_p0 }
  0x44   :  { %p1308_p3 = pnand %p1307_p2, %p1301_p13 }
  0x46   :  { %1311 = shalt.err (!%p1308_p3)
}
  0x47   :  { %63 = dma.hbm_to_vmem [thread:$0]  %s1582_s5, 4096, %s58_s15, [#allocation7], %s1365_s19, %s1365_s19, %s1366_s20  }
  0x48   :  { %s1312_s30 = scalar_lea.hbm %s1586_s9, 2048 }
  0x49   :  { %p1313_p4 = scmp.ne.s32.totalorder %s1586_s9, %s1312_s30  ;;  %p1316_p5 = scmp.lt.u32.totalorder %s1312_s30, %s1586_s9 }
  0x4b   :  { %p1318_p6 = pnand %p1316_p5, %p1313_p4 }
  0x4d   :  { %1321 = shalt.err (!%p1318_p6)
}
  0x4e   :  { %s1322_s1 = scalar_lea.vmem %s86_s17, 2048  ;;  %p1327_p8 = scmp.lt.s32.totalorder %s86_s17, %s86_s17 }
  0x4f   :  { %p1323_p7 = scmp.ne.s32.totalorder %s86_s17, %s1322_s1  ;;  %p1328_p9 = scmp.lt.s32.totalorder %s1322_s1, %s1322_s1 }
  0x51   :  { %p1329_p10 = por %p1328_p9, %p1327_p8 }
  0x53   :  { %p1330_p11 = pnand %p1329_p10, %p1323_p7 }
  0x55   :  { %1333 = shalt.err (!%p1330_p11)
}
  0x56   :  { %s1371_s5 = smov 64   ;;  %s1372_s19 = smov 4  }
  0x57   :  { %91 = dma.hbm_to_vmem [thread:$0]  %s1586_s9, 2048, %s86_s17, [#allocation10], %s1371_s5, %s1371_s5, %s1372_s19  }
  0x58   :  { %1356 = dma.done.wait [#allocation4], 128  }
  0x59   :  { %1357 = vsyncadd [#allocation4], 4294967168 }
  0x5a   :  { %1358 = dma.done.wait [#allocation7], 4608  }
  0x5b   :  { %1359 = vsyncadd [#allocation7], 4294962688 }
  0x5c   :  { %1360 = dma.done.wait [#allocation10], 6144  }
  0x5d   :  { %1361 = vsyncadd [#allocation10], 4294961152  ;;  %v1373_v1 = vmov 0   ;;  %v1106_v2 = vld [vmem:[#allocation6 + $0x4] ss:$8 sps:$4 sm:$0xff]   ;;  %v114_v6 = vld [vmem:[#allocation3] sm:$0xff] }
  0x5e   :  { %188 = vmatprep.mubr.bf16.mxu0 %v1373_v1  ;;  %1105 = vset.pattern.permute.xlu0 %v1373_v1  ;;  %v1108_v3 = vld [vmem:[#allocation6] ss:$8 sps:$4 sm:$0xff]   ;;  %v1109_v4 = vld [vmem:[#allocation6 + $0x14] ss:$8 sps:$4 sm:$0xff]   ;;  %v1111_v5 = vld [vmem:[#allocation6 + $0x10] ss:$8 sps:$4 sm:$0xff]   ;;  %v115_v10 = vpack.c.bf16 %v114_v6, %v114_v6 }
  0x5f   :  { %156 = vmatprep.subr.bf16.mxu0 %v1106_v2  ;;  %v1112_v7 = vld [vmem:[#allocation8 + $0x4] ss:$8 sps:$4 sm:$0xff]   ;;  %v1114_v8 = vld [vmem:[#allocation8] ss:$8 sps:$4 sm:$0xff]   ;;  %v1115_v9 = vld [vmem:[#allocation8 + $0x14] ss:$8 sps:$4 sm:$0xff]  }
  0x60   :  { %157 = vmatpush1.bf16.msra.mxu0 %v1108_v3  ;;  %433 = vmatprep.subr.bf16.mxu1 %v1112_v7  ;;  %v1117_v11 = vld [vmem:[#allocation8 + $0x10] ss:$8 sps:$4 sm:$0xff]   ;;  %vm152_vm0 = vcmask 261120   ;;  %v1118_v12 = vld [vmem:[#allocation8 + $0x24] ss:$8 sps:$4 sm:$0xff]   ;;  %vm1375_vm1 = vmmov 0  }
  0x61   :  { %158 = vmatprep.subr.bf16.mxu0 %v1109_v4  ;;  %434 = vmatpush1.bf16.msra.mxu1 %v1114_v8  ;;  %v1120_v13 = vld [vmem:[#allocation8 + $0x20] ss:$8 sps:$4 sm:$0xff]   ;;  %v1121_v14 = vld [vmem:[#allocation8 + $0x34] ss:$8 sps:$4 sm:$0xff]   ;;  %v1123_v15 = vld [vmem:[#allocation8 + $0x30] ss:$8 sps:$4 sm:$0xff]   ;;  %v122_v4 = vlaneseq }
  0x62   :  { %435 = vmatprep.subr.bf16.mxu1 %v1115_v9  ;;  %v1124_v16 = vld [vmem:[#allocation8 + $0x44] ss:$8 sps:$4 sm:$0xff]   ;;  %v1126_v17 = vld [vmem:[#allocation8 + $0x40] ss:$8 sps:$4 sm:$0xff]   ;;  %v1127_v18 = vld [vmem:[#allocation8 + $0x54] ss:$8 sps:$4 sm:$0xff]  }
  0x63   :  { %v1129_v19 = vld [vmem:[#allocation8 + $0x50] ss:$8 sps:$4 sm:$0xff]   ;;  %v1130_v20 = vld [vmem:[#allocation8 + $0x64] ss:$8 sps:$4 sm:$0xff]   ;;  %v1132_v21 = vld [vmem:[#allocation8 + $0x60] ss:$8 sps:$4 sm:$0xff]  }
  0x64   :  { %159 = vmatpush1.bf16.msra.mxu0 %v1111_v5  ;;  %v1133_v22 = vld [vmem:[#allocation8 + $0x74] ss:$8 sps:$4 sm:$0xff]   ;;  %v1135_v23 = vld [vmem:[#allocation8 + $0x70] ss:$8 sps:$4 sm:$0xff]   ;;  %v1136_v24 = vld [vmem:[#allocation8 + $0x84] ss:$8 sps:$4 sm:$0xff]  }
  0x65   :  { %436 = vmatpush1.bf16.msra.mxu1 %v1117_v11  ;;  %v1138_v25 = vld [vmem:[#allocation8 + $0x80] ss:$8 sps:$4 sm:$0xff]   ;;  %v1139_v26 = vld [vmem:[#allocation8 + $0x94] ss:$8 sps:$4 sm:$0xff]   ;;  %v1141_v27 = vld [vmem:[#allocation8 + $0x90] ss:$8 sps:$4 sm:$0xff]  }
  0x66   :  { %437 = vmatprep.subr.bf16.mxu1 %v1118_v12  ;;  %v1142_v28 = vld [vmem:[#allocation8 + $0xa4] ss:$8 sps:$4 sm:$0xff]   ;;  %v1144_v29 = vld [vmem:[#allocation8 + $0xa0] ss:$8 sps:$4 sm:$0xff]   ;;  %v1145_v30 = vld [vmem:[#allocation8 + $0xb4] ss:$8 sps:$4 sm:$0xff]  }
  0x67   :  { %980 = vmatmul.mubr.msk.bf16.vlgmr.msra.gmra.mrb[0].mxu0 %vm152_vm0, %v115_v10  ;;  %v1147_v31 = vld [vmem:[#allocation8 + $0xb0] ss:$8 sps:$4 sm:$0xff]   ;;  %v1148_v32 = vld [vmem:[#allocation8 + $0xc4] ss:$8 sps:$4 sm:$0xff]   ;;  %v1150_v33 = vld [vmem:[#allocation8 + $0xc0] ss:$8 sps:$4 sm:$0xff]  }
  0x68   :  { %v1151_v34 = vld [vmem:[#allocation8 + $0xd4] ss:$8 sps:$4 sm:$0xff]   ;;  %v1153_v35 = vld [vmem:[#allocation8 + $0xd0] ss:$8 sps:$4 sm:$0xff]   ;;  %v1154_v36 = vld [vmem:[#allocation8 + $0xe4] ss:$8 sps:$4 sm:$0xff]  }
  0x69   :  { %438 = vmatpush1.bf16.msra.mxu1 %v1120_v13  ;;  %v1156_v37 = vld [vmem:[#allocation8 + $0xe0] ss:$8 sps:$4 sm:$0xff]   ;;  %v1157_v38 = vld [vmem:[#allocation8 + $0xf4] ss:$8 sps:$4 sm:$0xff]   ;;  %v1159_v39 = vld [vmem:[#allocation8 + $0xf0] ss:$8 sps:$4 sm:$0xff]  }
  0x6a   :  { %439 = vmatprep.subr.bf16.mxu1 %v1121_v14  ;;  %v1160_v40 = vld [vmem:[#allocation9] ss:$8 sps:$4 sm:$0xff]   ;;  %v1162_v41 = vld [vmem:[#allocation9 + $0x4] ss:$8 sps:$4 sm:$0xff]   ;;  %v1165_v42 = vld [vmem:[#allocation9 + $0x14] ss:$8 sps:$4 sm:$0xff]  }
  0x6b   :  { %682 = vmatprep.subr.bf16.mxu0 %v1162_v41  ;;  %v1163_v43 = vld [vmem:[#allocation9 + $0x10] ss:$8 sps:$4 sm:$0xff]   ;;  %v1168_v44 = vld [vmem:[#allocation9 + $0x24] ss:$8 sps:$4 sm:$0xff]   ;;  %v1166_v45 = vld [vmem:[#allocation9 + $0x20] ss:$8 sps:$4 sm:$0xff]  }
  0x6c   :  { %683 = vmatpush1.bf16.msra.mxu0 %v1160_v40  ;;  %v1171_v46 = vld [vmem:[#allocation9 + $0x34] ss:$8 sps:$4 sm:$0xff]   ;;  %v1169_v47 = vld [vmem:[#allocation9 + $0x30] ss:$8 sps:$4 sm:$0xff]   ;;  %v1174_v48 = vld [vmem:[#allocation9 + $0x44] ss:$8 sps:$4 sm:$0xff]  }
  0x6d   :  { %440 = vmatpush1.bf16.msra.mxu1 %v1123_v15  ;;  %684 = vmatprep.subr.bf16.mxu0 %v1165_v42  ;;  %v1172_v49 = vld [vmem:[#allocation9 + $0x40] ss:$8 sps:$4 sm:$0xff]   ;;  %v1177_v50 = vld [vmem:[#allocation9 + $0x54] ss:$8 sps:$4 sm:$0xff]   ;;  %v1175_v51 = vld [vmem:[#allocation9 + $0x50] ss:$8 sps:$4 sm:$0xff]  }
  0x6e   :  { %441 = vmatprep.subr.bf16.mxu1 %v1124_v16  ;;  %v1180_v52 = vld [vmem:[#allocation9 + $0x64] ss:$8 sps:$4 sm:$0xff]   ;;  %v1178_v53 = vld [vmem:[#allocation9 + $0x60] ss:$8 sps:$4 sm:$0xff]   ;;  %v1183_v54 = vld [vmem:[#allocation9 + $0x74] ss:$8 sps:$4 sm:$0xff]  }
  0x6f   :  { %v1181_v55 = vld [vmem:[#allocation9 + $0x70] ss:$8 sps:$4 sm:$0xff]   ;;  %v1186_v56 = vld [vmem:[#allocation9 + $0x84] ss:$8 sps:$4 sm:$0xff]   ;;  %v1184_v57 = vld [vmem:[#allocation9 + $0x80] ss:$8 sps:$4 sm:$0xff]  }
  0x70   :  { %685 = vmatpush1.bf16.msra.mxu0 %v1163_v43  ;;  %v1189_v58 = vld [vmem:[#allocation9 + $0x94] ss:$8 sps:$4 sm:$0xff]   ;;  %v1187_v59 = vld [vmem:[#allocation9 + $0x90] ss:$8 sps:$4 sm:$0xff]   ;;  %v1192_v60 = vld [vmem:[#allocation9 + $0xa4] ss:$8 sps:$4 sm:$0xff]  }
  0x71   :  { %442 = vmatpush1.bf16.msra.mxu1 %v1126_v17  ;;  %686 = vmatprep.subr.bf16.mxu0 %v1168_v44  ;;  %v1190_v61 = vld [vmem:[#allocation9 + $0xa0] ss:$8 sps:$4 sm:$0xff]   ;;  %v1195_v62 = vld [vmem:[#allocation9 + $0xb4] ss:$8 sps:$4 sm:$0xff]   ;;  %v1193_v63 = vld [vmem:[#allocation9 + $0xb0] ss:$8 sps:$4 sm:$0xff]  }
  0x72   :  { %443 = vmatprep.subr.bf16.mxu1 %v1127_v18  ;;  %v1198_v0 = vld [vmem:[#allocation9 + $0xc4] ss:$8 sps:$4 sm:$0xff]   ;;  %v1196_v1 = vld [vmem:[#allocation9 + $0xc0] ss:$8 sps:$4 sm:$0xff]   ;;  %v1201_v2 = vld [vmem:[#allocation9 + $0xd4] ss:$8 sps:$4 sm:$0xff]  }
  0x73   :  { %v1199_v3 = vld [vmem:[#allocation9 + $0xd0] ss:$8 sps:$4 sm:$0xff]   ;;  %v123_v5 = vshrl.u32 %v122_v4, 7  ;;  %v1216_v43 = vld [vmem:[#allocation11 + $0x60] sm:$0xff]   ;;  %s1376_s26 = smov [#allocation12]   ;;  %vm957_vm2 = vcmask 57344  }
  0x74   :  { %687 = vmatpush1.bf16.msra.mxu0 %v1166_v45  ;;  %v120_v7 = vld [vmem:[%s1579_s2] sm:$0x3]  ;;  %v1217_v44 = vld [vmem:[#allocation11 + $0x20] sm:$0xff]   ;;  %v1218_v45 = vld [vmem:[#allocation11 + $0x68] sm:$0xff]   ;;  %s965_s25 = sshll.u32 %s1376_s26, 4  ;;  %s966_s25 = int_to_ptr.vmem [resolvable:$true] %s965_s25 }
  0x75   :  { %444 = vmatpush1.bf16.msra.mxu1 %v1129_v19  ;;  %688 = vmatprep.subr.bf16.mxu0 %v1171_v46  ;;  %v1519_v6 = vsub.s32 0, %v123_v5  ;;  %v1524_v8 = vsub.s32 1, %v123_v5  ;;  %v199_v10 = vld [vmem:[%s1580_s3] sm:$0x3]  ;;  %s1338_s27 = scalar_lea.vmem %s966_s25, 32  ;;  %p1339_p13 = scmp.lt.s32.totalorder %s966_s25, %s966_s25 }
  0x76   :  { %445 = vmatprep.subr.bf16.mxu1 %v1130_v20  ;;  %v213_v13 = vld [vmem:[%s1581_s4] sm:$0x3] }
  0x77   :  { %v125_v9 = vrot.slane %v120_v7, %v1519_v6  ;;  %v129_v11 = vrot.slane %v120_v7, %v1524_v8  ;;  %v204_v15 = vrot.slane %v199_v10, %v1519_v6  ;;  %v208_v18 = vrot.slane %v199_v10, %v1524_v8  ;;  %v1213_v40 = vld [vmem:[#allocation11 + $0x10] sm:$0xff]   ;;  %v1214_v41 = vld [vmem:[#allocation11 + $0x58] sm:$0xff]  }
  0x78   :  { %689 = vmatpush1.bf16.msra.mxu0 %v1169_v47  ;;  %v1215_v42 = vld [vmem:[#allocation11 + $0x18] sm:$0xff]  }
  0x79   :  { %446 = vmatpush1.bf16.msra.mxu1 %v1132_v21  ;;  %690 = vmatprep.subr.bf16.mxu0 %v1174_v48  ;;  %v218_v21 = vrot.slane %v213_v13, %v1519_v6  ;;  %v261_v46 = vld [vmem:[%s1583_s6] sm:$0x3] }
  0x7a   :  { %447 = vmatprep.subr.bf16.mxu1 %v1133_v22  ;;  %v266_v47 = vrot.slane %v261_v46, %v1519_v6  ;;  %v270_v48 = vrot.slane %v261_v46, %v1524_v8 }
  0x7c   :  { %691 = vmatpush1.bf16.msra.mxu0 %v1172_v49 }
  0x7d   :  { %448 = vmatpush1.bf16.msra.mxu1 %v1135_v23  ;;  %692 = vmatprep.subr.bf16.mxu0 %v1177_v50 }
  0x7e   :  { %449 = vmatprep.subr.bf16.mxu1 %v1136_v24  ;;  %v222_v24 = vrot.slane %v213_v13, %v1524_v8 }
  0x80   :  { %693 = vmatpush1.bf16.msra.mxu0 %v1175_v51 }
  0x81   :  { %450 = vmatpush1.bf16.msra.mxu1 %v1138_v25  ;;  %694 = vmatprep.subr.bf16.mxu0 %v1180_v52 }
  0x82   :  { %451 = vmatprep.subr.bf16.mxu1 %v1139_v26 }
  0x84   :  { %695 = vmatpush1.bf16.msra.mxu0 %v1178_v53 }
  0x85   :  { %452 = vmatpush1.bf16.msra.mxu1 %v1141_v27  ;;  %696 = vmatprep.subr.bf16.mxu0 %v1183_v54 }
  0x86   :  { %453 = vmatprep.subr.bf16.mxu1 %v1142_v28 }
  0x88   :  { %697 = vmatpush1.bf16.msra.mxu0 %v1181_v55 }
  0x89   :  { %454 = vmatpush1.bf16.msra.mxu1 %v1144_v29  ;;  %698 = vmatprep.subr.bf16.mxu0 %v1186_v56 }
  0x8a   :  { %455 = vmatprep.subr.bf16.mxu1 %v1145_v30 }
  0x8c   :  { %699 = vmatpush1.bf16.msra.mxu0 %v1184_v57 }
  0x8d   :  { %456 = vmatpush1.bf16.msra.mxu1 %v1147_v31  ;;  %700 = vmatprep.subr.bf16.mxu0 %v1189_v58  ;;  %v1204_v31 = vld [vmem:[#allocation9 + $0xe4] ss:$8 sps:$4 sm:$0xff]  }
  0x8e   :  { %457 = vmatprep.subr.bf16.mxu1 %v1148_v32  ;;  %v1202_v32 = vld [vmem:[#allocation9 + $0xe0] ss:$8 sps:$4 sm:$0xff]  }
  0x90   :  { %701 = vmatpush1.bf16.msra.mxu0 %v1187_v59  ;;  %v1219_v59 = vld [vmem:[#allocation11 + $0x28] sm:$0xff]  }
  0x91   :  { %458 = vmatpush1.bf16.msra.mxu1 %v1150_v33  ;;  %702 = vmatprep.subr.bf16.mxu0 %v1192_v60  ;;  %v1207_v33 = vld [vmem:[#allocation9 + $0xf4] ss:$8 sps:$4 sm:$0xff]  }
  0x92   :  { %459 = vmatprep.subr.bf16.mxu1 %v1151_v34  ;;  %v1205_v34 = vld [vmem:[#allocation9 + $0xf0] ss:$8 sps:$4 sm:$0xff]  }
  0x93   :  { %v1220_v60 = vld [vmem:[#allocation11 + $0x70] sm:$0xff]  }
  0x94   :  { %703 = vmatpush1.bf16.msra.mxu0 %v1190_v61  ;;  %v1221_v61 = vld [vmem:[#allocation11 + $0x30] sm:$0xff]  }
  0x95   :  { %460 = vmatpush1.bf16.msra.mxu1 %v1153_v35  ;;  %704 = vmatprep.subr.bf16.mxu0 %v1195_v62  ;;  %v1208_v35 = vld [vmem:[#allocation11 + $0x40] sm:$0xff]   ;;  %v1222_v62 = vld [vmem:[#allocation11 + $0x78] sm:$0xff]  }
  0x96   :  { %461 = vmatprep.subr.bf16.mxu1 %v1154_v36  ;;  %v1209_v36 = vld [vmem:[#allocation11] sm:$0xff]  }
  0x98   :  { %705 = vmatpush1.bf16.msra.mxu0 %v1193_v63  ;;  %v1223_v63 = vld [vmem:[#allocation11 + $0x38] sm:$0xff]  }
  0x99   :  { %462 = vmatpush1.bf16.msra.mxu1 %v1156_v37  ;;  %706 = vmatprep.subr.bf16.mxu0 %v1198_v0  ;;  %v1210_v37 = vld [vmem:[#allocation11 + $0x48] sm:$0xff]   ;;  %v510_v0 = vld [vmem:[%s1585_s8] sm:$0x3] }
  0x9a   :  { %463 = vmatprep.subr.bf16.mxu1 %v1157_v38  ;;  %v1211_v38 = vld [vmem:[#allocation11 + $0x8] sm:$0xff]  }
  0x9c   :  { %707 = vmatpush1.bf16.msra.mxu0 %v1196_v1  ;;  %v515_v1 = vrot.slane %v510_v0, %v1519_v6 }
  0x9d   :  { %464 = vmatpush1.bf16.msra.mxu1 %v1159_v39  ;;  %708 = vmatprep.subr.bf16.mxu0 %v1201_v2  ;;  %v1212_v39 = vld [vmem:[#allocation11 + $0x50] sm:$0xff]   ;;  %v519_v2 = vrot.slane %v510_v0, %v1524_v8 }
  0x9e   :  { %1062 = vmatprep.subr.bf16.mxu1 %v1208_v35  ;;  %v907_v8 = vld [vmem:[#allocation2] sm:$0x1] }
  0x9f   :  { %910 = vperm.xlu0 %1105, %v907_v8  }
  0xa0   :  { %709 = vmatpush1.bf16.msra.mxu0 %v1199_v3 }
  0xa1   :  { %710 = vmatprep.subr.bf16.mxu0 %v1204_v31 }
  0xa4   :  { %711 = vmatpush1.bf16.msra.mxu0 %v1202_v32 }
  0xa5   :  { %712 = vmatprep.subr.bf16.mxu0 %v1207_v33 }
  0xa8   :  { %713 = vmatpush1.bf16.msra.mxu0 %v1205_v34 }
 0x13a   :  { %v190_v12 = vpop.f32.mrb[0].mxu0 }
 0x13b   :  { %v191_v14 = vadd.f32 %v190_v12, %v125_v9  ;;  %v192_v16 = vpop.f32.mrb[1].mxu0 }
 0x13c   :  { %v193_v17 = vadd.f32 %v192_v16, %v129_v11  ;;  %v194_v19 = vpop.f32.mrb[2].mxu0 }
 0x13d   :  { %v197_v20 = vmax.f32 %v191_v14, 0.0  ;;  %v195_v22 = vpop.f32.mrb[3].mxu0  ;;  %v1045_v19 = vld [vmem:[%s1587_s10] ss:$0 sm:$0xff]  ;;  %s1334_s10 = scalar_lea.vmem %s966_s25, 16 }
 0x13e   :  { %v198_v23 = vmax.f32 %v193_v17, 0.0  ;;  %v1374_v17 = vmov 0.0   ;;  %p1335_p12 = scmp.ne.s32.totalorder %s966_s25, %s1334_s10  ;;  %p1340_p0 = scmp.lt.s32.totalorder %s1338_s27, %s1334_s10 }
 0x13f   :  { %v211_v25 = vmul.f32 %v204_v15, %v197_v20  ;;  %1086 = vmatprep.subr.bf16.mxu0 %v1374_v17 }
 0x140   :  { %v212_v26 = vmul.f32 %v208_v18, %v198_v23  ;;  %p1341_p1 = por %p1340_p0, %p1339_p13 }
 0x141   :  { %v1538_v27 = vadd.f32 %v218_v21, %v211_v25 }
 0x142   :  { %v1540_v28 = vadd.f32 %v222_v24, %v212_v26  ;;  %p1342_p2 = pnand %p1341_p1, %p1335_p12 }
 0x143   :  { %v227_v30 = vpack.c.bf16 %v1538_v27, %v1538_v27 }
 0x144   :  { %v228_v29 = vpack.c.bf16 %v1540_v28, %v1540_v28 }
 0x146   :  { %465 = vmatprep.mubr.bf16.mxu1 %v228_v29 }
 0x147   :  { %466 = vmatmul.mubr.bf16.vlgmr.msra.gmra.mrb[0].mxu1 %v227_v30 }
 0x148   :  { %1063 = vmatpush3.bf16.msra.mxu1 %v1209_v36 }
 0x149   :  { %1064 = vmatprep.subr.bf16.mxu1 %v1210_v37 }
 0x14c   :  { %1065 = vmatpush3.bf16.msra.mxu1 %v1211_v38 }
 0x14d   :  { %1066 = vmatprep.subr.bf16.mxu1 %v1212_v39 }
 0x150   :  { %1067 = vmatpush3.bf16.msra.mxu1 %v1213_v40 }
 0x151   :  { %1068 = vmatprep.subr.bf16.mxu1 %v1214_v41 }
 0x154   :  { %1069 = vmatpush3.bf16.msra.mxu1 %v1215_v42 }
 0x155   :  { %1070 = vmatprep.subr.bf16.mxu1 %v1216_v43 }
 0x158   :  { %1071 = vmatpush3.bf16.msra.mxu1 %v1217_v44 }
 0x159   :  { %1072 = vmatprep.subr.bf16.mxu1 %v1218_v45 }
 0x15c   :  { %1073 = vmatpush3.bf16.msra.mxu1 %v1219_v59 }
 0x15d   :  { %1074 = vmatprep.subr.bf16.mxu1 %v1220_v60 }
 0x160   :  { %1075 = vmatpush3.bf16.msra.mxu1 %v1221_v61 }
 0x161   :  { %1076 = vmatprep.subr.bf16.mxu1 %v1222_v62 }
 0x164   :  { %1077 = vmatpush3.bf16.msra.mxu1 %v1223_v63 }
 0x21a   :  { %v467_v49 = vpop.f32.mrb[0].mxu1 }
 0x21b   :  { %v468_v50 = vadd.f32 %v467_v49, %v266_v47  ;;  %v469_v51 = vpop.f32.mrb[1].mxu1 }
 0x21c   :  { %v470_v52 = vadd.f32 %v469_v51, %v270_v48  ;;  %v471_v53 = vpop.f32.mrb[2].mxu1 }
 0x21d   :  { %v474_v54 = vmax.f32 %v468_v50, 0.0  ;;  %v472_v55 = vpop.f32.mrb[3].mxu1 }
 0x21e   :  { %v475_v56 = vmax.f32 %v470_v52, 0.0 }
 0x21f   :  { %v476_v58 = vpack.c.bf16 %v474_v54, %v474_v54 }
 0x220   :  { %v477_v57 = vpack.c.bf16 %v475_v56, %v475_v56 }
 0x222   :  { %714 = vmatprep.mubr.bf16.mxu0 %v477_v57 }
 0x223   :  { %715 = vmatmul.mubr.bf16.vlgmr.msra.gmra.mrb[4].mxu0 %v476_v58 }
 0x224   :  { %1088 = vmatprep.mubr.msk.bf16.mxu0 %vm1375_vm1, %v1374_v17 }
 0x2f6   :  { %v716_v3 = vpop.f32.mrb[4].mxu0 }
 0x2f7   :  { %v717_v4 = vadd.f32 %v716_v3, %v515_v1  ;;  %v718_v5 = vpop.f32.mrb[5].mxu0 }
 0x2f8   :  { %v719_v7 = vadd.f32 %v718_v5, %v519_v2  ;;  %v720_v9 = vpop.f32.mrb[6].mxu0 }
 0x2f9   :  { %v723_v10 = vadd.f32 %v717_v4, %v1538_v27  ;;  %v721_v11 = vpop.f32.mrb[7].mxu0  ;;  %v905_v27 = vld [vmem:[%s1588_s11] sm:$0x1] }
 0x2fa   :  { %v724_v12 = vadd.f32 %v719_v7, %v1540_v28  ;;  %v911_v28 = vpop.permute.xlu0 %910 }
 0x2fb   :  { %v725_v13 = vmax.f32 %v723_v10, 0.0  ;;  %v916_v29 = vrot.slane %v911_v28, %v1519_v6 }
 0x2fc   :  { %v726_v14 = vmax.f32 %v724_v12, 0.0 }
 0x2fd   :  { %v727_v16 = vpack.c.bf16 %v725_v13, %v725_v13 }
 0x2fe   :  { %v728_v15 = vpack.c.bf16 %v726_v14, %v726_v14 }
 0x300   :  { %896 = vmatprep.mubr.bf16.mxu1 %v728_v15 }
 0x301   :  { %897 = vmatmul.mubr.bf16.vlgmr.msra.gmra.mrb[4].mxu1 %v727_v16 }
 0x3d4   :  { %v1078_v18 = vpop.f32.mrb[4].mxu1 }
 0x3d5   :  { %v1079_v20 = vpop.f32.mrb[5].mxu1 }
 0x3d6   :  { %v1080_v21 = vadd.f32 %v1079_v20, %v1078_v18  ;;  %v1081_v22 = vpop.f32.mrb[6].mxu1 }
 0x3d7   :  { %v1082_v23 = vpop.f32.mrb[7].mxu1 }
 0x3d8   :  { %v899_v24 = vadd.f32 %v1080_v21, %v1045_v19 }
 0x3da   :  { %v904_v25 = vmax.f32 %v899_v24, 0.0 }
 0x3dc   :  { %v906_v26 = vpack.c.bf16 %v904_v25, %v904_v25 }
 0x3de   :  { %1087 = vmatpush3.bf16.xpose.msra.mxu0 %v906_v26 }
 0x3e5   :  { %1089 = vmatmul.mubr.bf16.vlgmr.msra.gmra.mrb[8].mxu0 %v905_v27 }
 0x4b8   :  { %v951_v30 = vpop.f32.mrb[8].mxu0 }
 0x4b9   :  { %v952_v31 = vadd.f32 %v951_v30, %v916_v29  ;;  %v1090_v32 = vpop.f32.mrb[9].mxu0 }
 0x4ba   :  { %v954_v33 = vpop.f32.mrb[10].mxu0 }
 0x4bb   :  { %v1091_v34 = vpop.f32.mrb[11].mxu0  ;;  %958 = vst.msk [vmem:[#allocation12] sm:$0x1] %vm957_vm2, %v952_v31 }
 0x4bc   :  { %1345 = shalt.err (!%p1342_p2)
}
 0x4bd   :  { %s1346_s30 = scalar_lea.hbm %s1590_s13, 16 }
 0x4be   :  { %p1347_p3 = scmp.ne.s32.totalorder %s1590_s13, %s1346_s30  ;;  %p1350_p4 = scmp.lt.u32.totalorder %s1346_s30, %s1590_s13 }
 0x4c0   :  { %p1352_p5 = pnand %p1350_p4, %p1347_p3 }
 0x4c2   :  { %1355 = shalt.err (!%p1352_p5)
}
 0x4c3   :  { %968 = dma.vmem_to_hbm [thread:$0]  %s966_s25, 16, %s1590_s13, [#allocation5]  }
 0x4c4   :  { %1362 = dma.done.wait [#allocation5], 16  }
 0x4c5   :  { %1363 = vsyncadd [#allocation5], 4294967280 }
 0x4c6   :  { %972 = vsyncpa [#allocation4], 1 }
 0x4c7   :  { %973 = vsyncpa [#allocation7], 1 }
 0x4c8   :  { %974 = vsyncpa [#allocation10], 1 }
 0x4c9   :  { %975 = vsyncpa [#allocation5], 1 }

// kernel: tpu_custom_call.1
= control target key start
LH: loop header
LB: loop body
LE: loop exit
PB: predicated region body
PF: predicated region fallthrough
CT: control target
= control target key end

     0   :  { %s1577_s0 = inlined_call_operand.hbm [shape: f32[8,32], index: 0, kind: input, shape index: {}]   ;;  %s1578_s1 = inlined_call_operand.hbm [shape: bf16[32,256], index: 1, kind: input, shape index: {}]   ;;  %s1579_s2 = inlined_call_operand.vmem [shape: f32[1,256], index: 2, kind: input, shape index: {}]   ;;  %s1580_s3 = inlined_call_operand.vmem [shape: f32[1,256], index: 3, kind: input, shape index: {}]   ;;  %s1581_s4 = inlined_call_operand.vmem [shape: f32[1,256], index: 4, kind: input, shape index: {}]   ;;  %s1582_s5 = inlined_call_operand.hbm [shape: bf16[256,256], index: 5, kind: input, shape index: {}]   ;;  %s1583_s6 = inlined_call_operand.vmem [shape: f32[1,256], index: 6, kind: input, shape index: {}]   ;;  %s1584_s7 = inlined_call_operand.hbm [shape: bf16[256,256], index: 7, kind: input, shape index: {}]   ;;  %s1585_s8 = inlined_call_operand.vmem [shape: f32[1,256], index: 8, kind: input, shape index: {}]   ;;  %s1586_s9 = inlined_call_operand.hbm [shape: bf16[256,128], index: 9, kind: input, shape index: {}]   ;;  %s1587_s10 = inlined_call_operand.vmem [shape: f32[1,128], index: 10, kind: input, shape index: {}]   ;;  %s1588_s11 = inlined_call_operand.vmem [shape: bf16[1,128], index: 11, kind: input, shape index: {}]   ;;  %s1589_s12 = inlined_call_operand.<no memory space> [shape: f32[1,1], index: 12, kind: input, shape index: {}]   ;;  %s1590_s13 = inlined_call_operand.hbm [shape: f32[1,8], index: 13, kind: output, shape index: {}]  }
   0x1   :  { %v18_v0 = vstv %s1589_s12 }
   0x2   :  { %19 = vst [vmem:[#allocation2] sm:$0x1] %v18_v0 }
   0x3   :  { %20 = vsyncpa [#allocation4], 0 }
   0x4   :  { %21 = vsyncpa [#allocation7], 0 }
   0x5   :  { %22 = vsyncpa [#allocation10], 0 }
   0x6   :  { %23 = vsyncpa [#allocation5], 0  ;;  %s1364_s27 = smov [#allocation6]   ;;  %s1224_s14 = scalar_lea.hbm %s1578_s1, 512 }
   0x7   :  { %s39_s28 = sshll.u32 %s1364_s27, 4  ;;  %p1225_p0 = scmp.ne.s32.totalorder %s1578_s1, %s1224_s14  ;;  %s40_s28 = int_to_ptr.vmem [resolvable:$true] %s39_s28 }
   0x8   :  { %p1228_p1 = scmp.lt.u32.totalorder %s1224_s14, %s1578_s1 }
   0xa   :  { %p1230_p2 = pnand %p1228_p1, %p1225_p0 }
   0xc   :  { %1233 = shalt.err (!%p1230_p2)
}
   0xd   :  { %s1234_s12 = scalar_lea.vmem %s40_s28, 512  ;;  %p1239_p4 = scmp.lt.s32.totalorder %s40_s28, %s40_s28 }
   0xe   :  { %p1235_p3 = scmp.ne.s32.totalorder %s40_s28, %s1234_s12  ;;  %p1240_p5 = scmp.lt.s32.totalorder %s1234_s12, %s1234_s12 }
  0x10   :  { %p1241_p6 = por %p1240_p5, %p1239_p4 }
  0x12   :  { %p1242_p7 = pnand %p1241_p6, %p1235_p3 }
  0x14   :  { %1245 = shalt.err (!%p1242_p7)
}
  0x15   :  { %s1365_s19 = smov 128   ;;  %s1366_s20 = smov 8  }
  0x16   :  { %45 = dma.hbm_to_vmem [thread:$0]  %s1578_s1, 512, %s40_s28, [#allocation7], %s1365_s19, %s1365_s19, %s1366_s20  }
  0x17   :  { %s1367_s23 = smov [#allocation9]   ;;  %s1368_s25 = smov [#allocation3]  }
  0x18   :  { %s71_s24 = sshll.u32 %s1367_s23, 4  ;;  %s30_s26 = sshll.u32 %s1368_s25, 4  ;;  %s72_s24 = int_to_ptr.vmem [resolvable:$true] %s71_s24  ;;  %s31_s26 = int_to_ptr.vmem [resolvable:$true] %s30_s26 }
  0x19   :  { %s1246_s30 = scalar_lea.hbm %s1584_s7, 4096 }
  0x1a   :  { %p1247_p8 = scmp.ne.s32.totalorder %s1584_s7, %s1246_s30  ;;  %p1250_p9 = scmp.lt.u32.totalorder %s1246_s30, %s1584_s7 }
  0x1c   :  { %p1252_p10 = pnand %p1250_p9, %p1247_p8 }
  0x1e   :  { %1255 = shalt.err (!%p1252_p10)
}
  0x1f   :  { %s1256_s1 = scalar_lea.vmem %s72_s24, 4096  ;;  %p1261_p12 = scmp.lt.s32.totalorder %s72_s24, %s72_s24 }
  0x20   :  { %p1257_p11 = scmp.ne.s32.totalorder %s72_s24, %s1256_s1  ;;  %p1262_p13 = scmp.lt.s32.totalorder %s1256_s1, %s1256_s1 }
  0x22   :  { %p1263_p0 = por %p1262_p13, %p1261_p12 }
  0x24   :  { %p1264_p1 = pnand %p1263_p0, %p1257_p11 }
  0x26   :  { %1267 = shalt.err (!%p1264_p1)
}
  0x27   :  { %77 = dma.hbm_to_vmem [thread:$0]  %s1584_s7, 4096, %s72_s24, [#allocation10], %s1365_s19, %s1365_s19, %s1366_s20  }
  0x28   :  { %s1268_s22 = scalar_lea.hbm %s1577_s0, 128 }
  0x29   :  { %p1269_p2 = scmp.ne.s32.totalorder %s1577_s0, %s1268_s22  ;;  %p1272_p3 = scmp.lt.u32.totalorder %s1268_s22, %s1577_s0 }
  0x2b   :  { %p1274_p4 = pnand %p1272_p3, %p1269_p2 }
  0x2d   :  { %1277 = shalt.err (!%p1274_p4)
}
  0x2e   :  { %s1278_s30 = scalar_lea.vmem %s31_s26, 128  ;;  %p1283_p6 = scmp.lt.s32.totalorder %s31_s26, %s31_s26 }
  0x2f   :  { %p1279_p5 = scmp.ne.s32.totalorder %s31_s26, %s1278_s30  ;;  %p1284_p7 = scmp.lt.s32.totalorder %s1278_s30, %s1278_s30 }
  0x31   :  { %p1285_p8 = por %p1284_p7, %p1283_p6 }
  0x33   :  { %p1286_p9 = pnand %p1285_p8, %p1279_p5 }
  0x35   :  { %1289 = shalt.err (!%p1286_p9)
}
  0x36   :  { %33 = dma.hbm_to_vmem [thread:$0]  %s1577_s0, 128, %s31_s26, [#allocation4]  }
  0x37   :  { %s1369_s14 = smov [#allocation8]   ;;  %s1370_s16 = smov [#allocation11]  }
  0x38   :  { %s57_s15 = sshll.u32 %s1369_s14, 4  ;;  %s85_s17 = sshll.u32 %s1370_s16, 4  ;;  %s58_s15 = int_to_ptr.vmem [resolvable:$true] %s57_s15  ;;  %s86_s17 = int_to_ptr.vmem [resolvable:$true] %s85_s17 }
  0x39   :  { %s1290_s18 = scalar_lea.hbm %s1582_s5, 4096 }
  0x3a   :  { %p1291_p10 = scmp.ne.s32.totalorder %s1582_s5, %s1290_s18  ;;  %p1294_p11 = scmp.lt.u32.totalorder %s1290_s18, %s1582_s5 }
  0x3c   :  { %p1296_p12 = pnand %p1294_p11, %p1291_p10 }
  0x3e   :  { %1299 = shalt.err (!%p1296_p12)
}
  0x3f   :  { %s1300_s0 = scalar_lea.vmem %s58_s15, 4096  ;;  %p1305_p0 = scmp.lt.s32.totalorder %s58_s15, %s58_s15 }
  0x40   :  { %p1301_p13 = scmp.ne.s32.totalorder %s58_s15, %s1300_s0  ;;  %p1306_p1 = scmp.lt.s32.totalorder %s1300_s0, %s1300_s0 }
  0x42   :  { %p1307_p2 = por %p1306_p1, %p1305_p0 }
  0x44   :  { %p1308_p3 = pnand %p1307_p2, %p1301_p13 }
  0x46   :  { %1311 = shalt.err (!%p1308_p3)
}
  0x47   :  { %63 = dma.hbm_to_vmem [thread:$0]  %s1582_s5, 4096, %s58_s15, [#allocation7], %s1365_s19, %s1365_s19, %s1366_s20  }
  0x48   :  { %s1312_s30 = scalar_lea.hbm %s1586_s9, 2048 }
  0x49   :  { %p1313_p4 = scmp.ne.s32.totalorder %s1586_s9, %s1312_s30  ;;  %p1316_p5 = scmp.lt.u32.totalorder %s1312_s30, %s1586_s9 }
  0x4b   :  { %p1318_p6 = pnand %p1316_p5, %p1313_p4 }
  0x4d   :  { %1321 = shalt.err (!%p1318_p6)
}
  0x4e   :  { %s1322_s1 = scalar_lea.vmem %s86_s17, 2048  ;;  %p1327_p8 = scmp.lt.s32.totalorder %s86_s17, %s86_s17 }
  0x4f   :  { %p1323_p7 = scmp.ne.s32.totalorder %s86_s17, %s1322_s1  ;;  %p1328_p9 = scmp.lt.s32.totalorder %s1322_s1, %s1322_s1 }
  0x51   :  { %p1329_p10 = por %p1328_p9, %p1327_p8 }
  0x53   :  { %p1330_p11 = pnand %p1329_p10, %p1323_p7 }
  0x55   :  { %1333 = shalt.err (!%p1330_p11)
}
  0x56   :  { %s1371_s5 = smov 64   ;;  %s1372_s19 = smov 4  }
  0x57   :  { %91 = dma.hbm_to_vmem [thread:$0]  %s1586_s9, 2048, %s86_s17, [#allocation10], %s1371_s5, %s1371_s5, %s1372_s19  }
  0x58   :  { %1356 = dma.done.wait [#allocation4], 128  }
  0x59   :  { %1357 = vsyncadd [#allocation4], 4294967168 }
  0x5a   :  { %1358 = dma.done.wait [#allocation7], 4608  }
  0x5b   :  { %1359 = vsyncadd [#allocation7], 4294962688 }
  0x5c   :  { %1360 = dma.done.wait [#allocation10], 6144  }
  0x5d   :  { %1361 = vsyncadd [#allocation10], 4294961152  ;;  %v1373_v1 = vmov 0   ;;  %v1106_v2 = vld [vmem:[#allocation6 + $0x4] ss:$8 sps:$4 sm:$0xff]   ;;  %v114_v6 = vld [vmem:[#allocation3] sm:$0xff] }
  0x5e   :  { %188 = vmatprep.mubr.bf16.mxu0 %v1373_v1  ;;  %1105 = vset.pattern.permute.xlu0 %v1373_v1  ;;  %v1108_v3 = vld [vmem:[#allocation6] ss:$8 sps:$4 sm:$0xff]   ;;  %v1109_v4 = vld [vmem:[#allocation6 + $0x14] ss:$8 sps:$4 sm:$0xff]   ;;  %v1111_v5 = vld [vmem:[#allocation6 + $0x10] ss:$8 sps:$4 sm:$0xff]   ;;  %v115_v10 = vpack.c.bf16 %v114_v6, %v114_v6 }
  0x5f   :  { %156 = vmatprep.subr.bf16.mxu0 %v1106_v2  ;;  %v1112_v7 = vld [vmem:[#allocation8 + $0x4] ss:$8 sps:$4 sm:$0xff]   ;;  %v1114_v8 = vld [vmem:[#allocation8] ss:$8 sps:$4 sm:$0xff]   ;;  %v1115_v9 = vld [vmem:[#allocation8 + $0x14] ss:$8 sps:$4 sm:$0xff]  }
  0x60   :  { %157 = vmatpush1.bf16.msra.mxu0 %v1108_v3  ;;  %433 = vmatprep.subr.bf16.mxu1 %v1112_v7  ;;  %v1117_v11 = vld [vmem:[#allocation8 + $0x10] ss:$8 sps:$4 sm:$0xff]   ;;  %vm152_vm0 = vcmask 261120   ;;  %v1118_v12 = vld [vmem:[#allocation8 + $0x24] ss:$8 sps:$4 sm:$0xff]   ;;  %vm1375_vm1 = vmmov 0  }
  0x61   :  { %158 = vmatprep.subr.bf16.mxu0 %v1109_v4  ;;  %434 = vmatpush1.bf16.msra.mxu1 %v1114_v8  ;;  %v1120_v13 = vld [vmem:[#allocation8 + $0x20] ss:$8 sps:$4 sm:$0xff]   ;;  %v1121_v14 = vld [vmem:[#allocation8 + $0x34] ss:$8 sps:$4 sm:$0xff]   ;;  %v1123_v15 = vld [vmem:[#allocation8 + $0x30] ss:$8 sps:$4 sm:$0xff]   ;;  %v122_v4 = vlaneseq }
  0x62   :  { %435 = vmatprep.subr.bf16.mxu1 %v1115_v9  ;;  %v1124_v16 = vld [vmem:[#allocation8 + $0x44] ss:$8 sps:$4 sm:$0xff]   ;;  %v1126_v17 = vld [vmem:[#allocation8 + $0x40] ss:$8 sps:$4 sm:$0xff]   ;;  %v1127_v18 = vld [vmem:[#allocation8 + $0x54] ss:$8 sps:$4 sm:$0xff]  }
  0x63   :  { %v1129_v19 = vld [vmem:[#allocation8 + $0x50] ss:$8 sps:$4 sm:$0xff]   ;;  %v1130_v20 = vld [vmem:[#allocation8 + $0x64] ss:$8 sps:$4 sm:$0xff]   ;;  %v1132_v21 = vld [vmem:[#allocation8 + $0x60] ss:$8 sps:$4 sm:$0xff]  }
  0x64   :  { %159 = vmatpush1.bf16.msra.mxu0 %v1111_v5  ;;  %v1133_v22 = vld [vmem:[#allocation8 + $0x74] ss:$8 sps:$4 sm:$0xff]   ;;  %v1135_v23 = vld [vmem:[#allocation8 + $0x70] ss:$8 sps:$4 sm:$0xff]   ;;  %v1136_v24 = vld [vmem:[#allocation8 + $0x84] ss:$8 sps:$4 sm:$0xff]  }
  0x65   :  { %436 = vmatpush1.bf16.msra.mxu1 %v1117_v11  ;;  %v1138_v25 = vld [vmem:[#allocation8 + $0x80] ss:$8 sps:$4 sm:$0xff]   ;;  %v1139_v26 = vld [vmem:[#allocation8 + $0x94] ss:$8 sps:$4 sm:$0xff]   ;;  %v1141_v27 = vld [vmem:[#allocation8 + $0x90] ss:$8 sps:$4 sm:$0xff]  }
  0x66   :  { %437 = vmatprep.subr.bf16.mxu1 %v1118_v12  ;;  %v1142_v28 = vld [vmem:[#allocation8 + $0xa4] ss:$8 sps:$4 sm:$0xff]   ;;  %v1144_v29 = vld [vmem:[#allocation8 + $0xa0] ss:$8 sps:$4 sm:$0xff]   ;;  %v1145_v30 = vld [vmem:[#allocation8 + $0xb4] ss:$8 sps:$4 sm:$0xff]  }
  0x67   :  { %980 = vmatmul.mubr.msk.bf16.vlgmr.msra.gmra.mrb[0].mxu0 %vm152_vm0, %v115_v10  ;;  %v1147_v31 = vld [vmem:[#allocation8 + $0xb0] ss:$8 sps:$4 sm:$0xff]   ;;  %v1148_v32 = vld [vmem:[#allocation8 + $0xc4] ss:$8 sps:$4 sm:$0xff]   ;;  %v1150_v33 = vld [vmem:[#allocation8 + $0xc0] ss:$8 sps:$4 sm:$0xff]  }
  0x68   :  { %v1151_v34 = vld [vmem:[#allocation8 + $0xd4] ss:$8 sps:$4 sm:$0xff]   ;;  %v1153_v35 = vld [vmem:[#allocation8 + $0xd0] ss:$8 sps:$4 sm:$0xff]   ;;  %v1154_v36 = vld [vmem:[#allocation8 + $0xe4] ss:$8 sps:$4 sm:$0xff]  }
  0x69   :  { %438 = vmatpush1.bf16.msra.mxu1 %v1120_v13  ;;  %v1156_v37 = vld [vmem:[#allocation8 + $0xe0] ss:$8 sps:$4 sm:$0xff]   ;;  %v1157_v38 = vld [vmem:[#allocation8 + $0xf4] ss:$8 sps:$4 sm:$0xff]   ;;  %v1159_v39 = vld [vmem:[#allocation8 + $0xf0] ss:$8 sps:$4 sm:$0xff]  }
  0x6a   :  { %439 = vmatprep.subr.bf16.mxu1 %v1121_v14  ;;  %v1160_v40 = vld [vmem:[#allocation9] ss:$8 sps:$4 sm:$0xff]   ;;  %v1162_v41 = vld [vmem:[#allocation9 + $0x4] ss:$8 sps:$4 sm:$0xff]   ;;  %v1165_v42 = vld [vmem:[#allocation9 + $0x14] ss:$8 sps:$4 sm:$0xff]  }
  0x6b   :  { %682 = vmatprep.subr.bf16.mxu0 %v1162_v41  ;;  %v1163_v43 = vld [vmem:[#allocation9 + $0x10] ss:$8 sps:$4 sm:$0xff]   ;;  %v1168_v44 = vld [vmem:[#allocation9 + $0x24] ss:$8 sps:$4 sm:$0xff]   ;;  %v1166_v45 = vld [vmem:[#allocation9 + $0x20] ss:$8 sps:$4 sm:$0xff]  }
  0x6c   :  { %683 = vmatpush1.bf16.msra.mxu0 %v1160_v40  ;;  %v1171_v46 = vld [vmem:[#allocation9 + $0x34] ss:$8 sps:$4 sm:$0xff]   ;;  %v1169_v47 = vld [vmem:[#allocation9 + $0x30] ss:$8 sps:$4 sm:$0xff]   ;;  %v1174_v48 = vld [vmem:[#allocation9 + $0x44] ss:$8 sps:$4 sm:$0xff]  }
  0x6d   :  { %440 = vmatpush1.bf16.msra.mxu1 %v1123_v15  ;;  %684 = vmatprep.subr.bf16.mxu0 %v1165_v42  ;;  %v1172_v49 = vld [vmem:[#allocation9 + $0x40] ss:$8 sps:$4 sm:$0xff]   ;;  %v1177_v50 = vld [vmem:[#allocation9 + $0x54] ss:$8 sps:$4 sm:$0xff]   ;;  %v1175_v51 = vld [vmem:[#allocation9 + $0x50] ss:$8 sps:$4 sm:$0xff]  }
  0x6e   :  { %441 = vmatprep.subr.bf16.mxu1 %v1124_v16  ;;  %v1180_v52 = vld [vmem:[#allocation9 + $0x64] ss:$8 sps:$4 sm:$0xff]   ;;  %v1178_v53 = vld [vmem:[#allocation9 + $0x60] ss:$8 sps:$4 sm:$0xff]   ;;  %v1183_v54 = vld [vmem:[#allocation9 + $0x74] ss:$8 sps:$4 sm:$0xff]  }
  0x6f   :  { %v1181_v55 = vld [vmem:[#allocation9 + $0x70] ss:$8 sps:$4 sm:$0xff]   ;;  %v1186_v56 = vld [vmem:[#allocation9 + $0x84] ss:$8 sps:$4 sm:$0xff]   ;;  %v1184_v57 = vld [vmem:[#allocation9 + $0x80] ss:$8 sps:$4 sm:$0xff]  }
  0x70   :  { %685 = vmatpush1.bf16.msra.mxu0 %v1163_v43  ;;  %v1189_v58 = vld [vmem:[#allocation9 + $0x94] ss:$8 sps:$4 sm:$0xff]   ;;  %v1187_v59 = vld [vmem:[#allocation9 + $0x90] ss:$8 sps:$4 sm:$0xff]   ;;  %v1192_v60 = vld [vmem:[#allocation9 + $0xa4] ss:$8 sps:$4 sm:$0xff]  }
  0x71   :  { %442 = vmatpush1.bf16.msra.mxu1 %v1126_v17  ;;  %686 = vmatprep.subr.bf16.mxu0 %v1168_v44  ;;  %v1190_v61 = vld [vmem:[#allocation9 + $0xa0] ss:$8 sps:$4 sm:$0xff]   ;;  %v1195_v62 = vld [vmem:[#allocation9 + $0xb4] ss:$8 sps:$4 sm:$0xff]   ;;  %v1193_v63 = vld [vmem:[#allocation9 + $0xb0] ss:$8 sps:$4 sm:$0xff]  }
  0x72   :  { %443 = vmatprep.subr.bf16.mxu1 %v1127_v18  ;;  %v1198_v0 = vld [vmem:[#allocation9 + $0xc4] ss:$8 sps:$4 sm:$0xff]   ;;  %v1196_v1 = vld [vmem:[#allocation9 + $0xc0] ss:$8 sps:$4 sm:$0xff]   ;;  %v1201_v2 = vld [vmem:[#allocation9 + $0xd4] ss:$8 sps:$4 sm:$0xff]  }
  0x73   :  { %v1199_v3 = vld [vmem:[#allocation9 + $0xd0] ss:$8 sps:$4 sm:$0xff]   ;;  %v123_v5 = vshrl.u32 %v122_v4, 7  ;;  %v1216_v43 = vld [vmem:[#allocation11 + $0x60] sm:$0xff]   ;;  %s1376_s26 = smov [#allocation12]   ;;  %vm957_vm2 = vcmask 57344  }
  0x74   :  { %687 = vmatpush1.bf16.msra.mxu0 %v1166_v45  ;;  %v120_v7 = vld [vmem:[%s1579_s2] sm:$0x3]  ;;  %v1217_v44 = vld [vmem:[#allocation11 + $0x20] sm:$0xff]   ;;  %v1218_v45 = vld [vmem:[#allocation11 + $0x68] sm:$0xff]   ;;  %s965_s25 = sshll.u32 %s1376_s26, 4  ;;  %s966_s25 = int_to_ptr.vmem [resolvable:$true] %s965_s25 }
  0x75   :  { %444 = vmatpush1.bf16.msra.mxu1 %v1129_v19  ;;  %688 = vmatprep.subr.bf16.mxu0 %v1171_v46  ;;  %v1519_v6 = vsub.s32 0, %v123_v5  ;;  %v1524_v8 = vsub.s32 1, %v123_v5  ;;  %v199_v10 = vld [vmem:[%s1580_s3] sm:$0x3]  ;;  %s1338_s27 = scalar_lea.vmem %s966_s25, 32  ;;  %p1339_p13 = scmp.lt.s32.totalorder %s966_s25, %s966_s25 }
  0x76   :  { %445 = vmatprep.subr.bf16.mxu1 %v1130_v20  ;;  %v213_v13 = vld [vmem:[%s1581_s4] sm:$0x3] }
  0x77   :  { %v125_v9 = vrot.slane %v120_v7, %v1519_v6  ;;  %v129_v11 = vrot.slane %v120_v7, %v1524_v8  ;;  %v204_v15 = vrot.slane %v199_v10, %v1519_v6  ;;  %v208_v18 = vrot.slane %v199_v10, %v1524_v8  ;;  %v1213_v40 = vld [vmem:[#allocation11 + $0x10] sm:$0xff]   ;;  %v1214_v41 = vld [vmem:[#allocation11 + $0x58] sm:$0xff]  }
  0x78   :  { %689 = vmatpush1.bf16.msra.mxu0 %v1169_v47  ;;  %v1215_v42 = vld [vmem:[#allocation11 + $0x18] sm:$0xff]  }
  0x79   :  { %446 = vmatpush1.bf16.msra.mxu1 %v1132_v21  ;;  %690 = vmatprep.subr.bf16.mxu0 %v1174_v48  ;;  %v218_v21 = vrot.slane %v213_v13, %v1519_v6  ;;  %v261_v46 = vld [vmem:[%s1583_s6] sm:$0x3] }
  0x7a   :  { %447 = vmatprep.subr.bf16.mxu1 %v1133_v22  ;;  %v266_v47 = vrot.slane %v261_v46, %v1519_v6  ;;  %v270_v48 = vrot.slane %v261_v46, %v1524_v8 }
  0x7c   :  { %691 = vmatpush1.bf16.msra.mxu0 %v1172_v49 }
  0x7d   :  { %448 = vmatpush1.bf16.msra.mxu1 %v1135_v23  ;;  %692 = vmatprep.subr.bf16.mxu0 %v1177_v50 }
  0x7e   :  { %449 = vmatprep.subr.bf16.mxu1 %v1136_v24  ;;  %v222_v24 = vrot.slane %v213_v13, %v1524_v8 }
  0x80   :  { %693 = vmatpush1.bf16.msra.mxu0 %v1175_v51 }
  0x81   :  { %450 = vmatpush1.bf16.msra.mxu1 %v1138_v25  ;;  %694 = vmatprep.subr.bf16.mxu0 %v1180_v52 }
  0x82   :  { %451 = vmatprep.subr.bf16.mxu1 %v1139_v26 }
  0x84   :  { %695 = vmatpush1.bf16.msra.mxu0 %v1178_v53 }
  0x85   :  { %452 = vmatpush1.bf16.msra.mxu1 %v1141_v27  ;;  %696 = vmatprep.subr.bf16.mxu0 %v1183_v54 }
  0x86   :  { %453 = vmatprep.subr.bf16.mxu1 %v1142_v28 }
  0x88   :  { %697 = vmatpush1.bf16.msra.mxu0 %v1181_v55 }
  0x89   :  { %454 = vmatpush1.bf16.msra.mxu1 %v1144_v29  ;;  %698 = vmatprep.subr.bf16.mxu0 %v1186_v56 }
  0x8a   :  { %455 = vmatprep.subr.bf16.mxu1 %v1145_v30 }
  0x8c   :  { %699 = vmatpush1.bf16.msra.mxu0 %v1184_v57 }
  0x8d   :  { %456 = vmatpush1.bf16.msra.mxu1 %v1147_v31  ;;  %700 = vmatprep.subr.bf16.mxu0 %v1189_v58  ;;  %v1204_v31 = vld [vmem:[#allocation9 + $0xe4] ss:$8 sps:$4 sm:$0xff]  }
  0x8e   :  { %457 = vmatprep.subr.bf16.mxu1 %v1148_v32  ;;  %v1202_v32 = vld [vmem:[#allocation9 + $0xe0] ss:$8 sps:$4 sm:$0xff]  }
  0x90   :  { %701 = vmatpush1.bf16.msra.mxu0 %v1187_v59  ;;  %v1219_v59 = vld [vmem:[#allocation11 + $0x28] sm:$0xff]  }
  0x91   :  { %458 = vmatpush1.bf16.msra.mxu1 %v1150_v33  ;;  %702 = vmatprep.subr.bf16.mxu0 %v1192_v60  ;;  %v1207_v33 = vld [vmem:[#allocation9 + $0xf4] ss:$8 sps:$4 sm:$0xff]  }
  0x92   :  { %459 = vmatprep.subr.bf16.mxu1 %v1151_v34  ;;  %v1205_v34 = vld [vmem:[#allocation9 + $0xf0] ss:$8 sps:$4 sm:$0xff]  }
  0x93   :  { %v1220_v60 = vld [vmem:[#allocation11 + $0x70] sm:$0xff]  }
  0x94   :  { %703 = vmatpush1.bf16.msra.mxu0 %v1190_v61  ;;  %v1221_v61 = vld [vmem:[#allocation11 + $0x30] sm:$0xff]  }
  0x95   :  { %460 = vmatpush1.bf16.msra.mxu1 %v1153_v35  ;;  %704 = vmatprep.subr.bf16.mxu0 %v1195_v62  ;;  %v1208_v35 = vld [vmem:[#allocation11 + $0x40] sm:$0xff]   ;;  %v1222_v62 = vld [vmem:[#allocation11 + $0x78] sm:$0xff]  }
  0x96   :  { %461 = vmatprep.subr.bf16.mxu1 %v1154_v36  ;;  %v1209_v36 = vld [vmem:[#allocation11] sm:$0xff]  }
  0x98   :  { %705 = vmatpush1.bf16.msra.mxu0 %v1193_v63  ;;  %v1223_v63 = vld [vmem:[#allocation11 + $0x38] sm:$0xff]  }
  0x99   :  { %462 = vmatpush1.bf16.msra.mxu1 %v1156_v37  ;;  %706 = vmatprep.subr.bf16.mxu0 %v1198_v0  ;;  %v1210_v37 = vld [vmem:[#allocation11 + $0x48] sm:$0xff]   ;;  %v510_v0 = vld [vmem:[%s1585_s8] sm:$0x3] }
  0x9a   :  { %463 = vmatprep.subr.bf16.mxu1 %v1157_v38  ;;  %v1211_v38 = vld [vmem:[#allocation11 + $0x8] sm:$0xff]  }
  0x9c   :  { %707 = vmatpush1.bf16.msra.mxu0 %v1196_v1  ;;  %v515_v1 = vrot.slane %v510_v0, %v1519_v6 }
  0x9d   :  { %464 = vmatpush1.bf16.msra.mxu1 %v1159_v39  ;;  %708 = vmatprep.subr.bf16.mxu0 %v1201_v2  ;;  %v1212_v39 = vld [vmem:[#allocation11 + $0x50] sm:$0xff]   ;;  %v519_v2 = vrot.slane %v510_v0, %v1524_v8 }
  0x9e   :  { %1062 = vmatprep.subr.bf16.mxu1 %v1208_v35  ;;  %v907_v8 = vld [vmem:[#allocation2] sm:$0x1] }
  0x9f   :  { %910 = vperm.xlu0 %1105, %v907_v8  }
  0xa0   :  { %709 = vmatpush1.bf16.msra.mxu0 %v1199_v3 }
  0xa1   :  { %710 = vmatprep.subr.bf16.mxu0 %v1204_v31 }
  0xa4   :  { %711 = vmatpush1.bf16.msra.mxu0 %v1202_v32 }
  0xa5   :  { %712 = vmatprep.subr.bf16.mxu0 %v1207_v33 }
  0xa8   :  { %713 = vmatpush1.bf16.msra.mxu0 %v1205_v34 }
 0x13a   :  { %v190_v12 = vpop.f32.mrb[0].mxu0 }
 0x13b   :  { %v191_v14 = vadd.f32 %v190_v12, %v125_v9  ;;  %v192_v16 = vpop.f32.mrb[1].mxu0 }
 0x13c   :  { %v193_v17 = vadd.f32 %v192_v16, %v129_v11  ;;  %v194_v19 = vpop.f32.mrb[2].mxu0 }
 0x13d   :  { %v197_v20 = vmax.f32 %v191_v14, 0.0  ;;  %v195_v22 = vpop.f32.mrb[3].mxu0  ;;  %v1045_v19 = vld [vmem:[%s1587_s10] ss:$0 sm:$0xff]  ;;  %s1334_s10 = scalar_lea.vmem %s966_s25, 16 }
 0x13e   :  { %v198_v23 = vmax.f32 %v193_v17, 0.0  ;;  %v1374_v17 = vmov 0.0   ;;  %p1335_p12 = scmp.ne.s32.totalorder %s966_s25, %s1334_s10  ;;  %p1340_p0 = scmp.lt.s32.totalorder %s1338_s27, %s1334_s10 }
 0x13f   :  { %v211_v25 = vmul.f32 %v204_v15, %v197_v20  ;;  %1086 = vmatprep.subr.bf16.mxu0 %v1374_v17 }
 0x140   :  { %v212_v26 = vmul.f32 %v208_v18, %v198_v23  ;;  %p1341_p1 = por %p1340_p0, %p1339_p13 }
 0x141   :  { %v1538_v27 = vadd.f32 %v218_v21, %v211_v25 }
 0x142   :  { %v1540_v28 = vadd.f32 %v222_v24, %v212_v26  ;;  %p1342_p2 = pnand %p1341_p1, %p1335_p12 }
 0x143   :  { %v227_v30 = vpack.c.bf16 %v1538_v27, %v1538_v27 }
 0x144   :  { %v228_v29 = vpack.c.bf16 %v1540_v28, %v1540_v28 }
 0x146   :  { %465 = vmatprep.mubr.bf16.mxu1 %v228_v29 }
 0x147   :  { %466 = vmatmul.mubr.bf16.vlgmr.msra.gmra.mrb[0].mxu1 %v227_v30 }
 0x148   :  { %1063 = vmatpush3.bf16.msra.mxu1 %v1209_v36 }
 0x149   :  { %1064 = vmatprep.subr.bf16.mxu1 %v1210_v37 }
 0x14c   :  { %1065 = vmatpush3.bf16.msra.mxu1 %v1211_v38 }
 0x14d   :  { %1066 = vmatprep.subr.bf16.mxu1 %v1212_v39 }
 0x150   :  { %1067 = vmatpush3.bf16.msra.mxu1 %v1213_v40 }
 0x151   :  { %1068 = vmatprep.subr.bf16.mxu1 %v1214_v41 }
 0x154   :  { %1069 = vmatpush3.bf16.msra.mxu1 %v1215_v42 }
 0x155   :  { %1070 = vmatprep.subr.bf16.mxu1 %v1216_v43 }
 0x158   :  { %1071 = vmatpush3.bf16.msra.mxu1 %v1217_v44 }
 0x159   :  { %1072 = vmatprep.subr.bf16.mxu1 %v1218_v45 }
 0x15c   :  { %1073 = vmatpush3.bf16.msra.mxu1 %v1219_v59 }
 0x15d   :  { %1074 = vmatprep.subr.bf16.mxu1 %v1220_v60 }
 0x160   :  { %1075 = vmatpush3.bf16.msra.mxu1 %v1221_v61 }
 0x161   :  { %1076 = vmatprep.subr.bf16.mxu1 %v1222_v62 }
 0x164   :  { %1077 = vmatpush3.bf16.msra.mxu1 %v1223_v63 }
 0x21a   :  { %v467_v49 = vpop.f32.mrb[0].mxu1 }
 0x21b   :  { %v468_v50 = vadd.f32 %v467_v49, %v266_v47  ;;  %v469_v51 = vpop.f32.mrb[1].mxu1 }
 0x21c   :  { %v470_v52 = vadd.f32 %v469_v51, %v270_v48  ;;  %v471_v53 = vpop.f32.mrb[2].mxu1 }
 0x21d   :  { %v474_v54 = vmax.f32 %v468_v50, 0.0  ;;  %v472_v55 = vpop.f32.mrb[3].mxu1 }
 0x21e   :  { %v475_v56 = vmax.f32 %v470_v52, 0.0 }
 0x21f   :  { %v476_v58 = vpack.c.bf16 %v474_v54, %v474_v54 }
 0x220   :  { %v477_v57 = vpack.c.bf16 %v475_v56, %v475_v56 }
 0x222   :  { %714 = vmatprep.mubr.bf16.mxu0 %v477_v57 }
 0x223   :  { %715 = vmatmul.mubr.bf16.vlgmr.msra.gmra.mrb[4].mxu0 %v476_v58 }
 0x224   :  { %1088 = vmatprep.mubr.msk.bf16.mxu0 %vm1375_vm1, %v1374_v17 }
 0x2f6   :  { %v716_v3 = vpop.f32.mrb[4].mxu0 }
 0x2f7   :  { %v717_v4 = vadd.f32 %v716_v3, %v515_v1  ;;  %v718_v5 = vpop.f32.mrb[5].mxu0 }
 0x2f8   :  { %v719_v7 = vadd.f32 %v718_v5, %v519_v2  ;;  %v720_v9 = vpop.f32.mrb[6].mxu0 }
 0x2f9   :  { %v723_v10 = vadd.f32 %v717_v4, %v1538_v27  ;;  %v721_v11 = vpop.f32.mrb[7].mxu0  ;;  %v905_v27 = vld [vmem:[%s1588_s11] sm:$0x1] }
 0x2fa   :  { %v724_v12 = vadd.f32 %v719_v7, %v1540_v28  ;;  %v911_v28 = vpop.permute.xlu0 %910 }
 0x2fb   :  { %v725_v13 = vmax.f32 %v723_v10, 0.0  ;;  %v916_v29 = vrot.slane %v911_v28, %v1519_v6 }
 0x2fc   :  { %v726_v14 = vmax.f32 %v724_v12, 0.0 }
 0x2fd   :  { %v727_v16 = vpack.c.bf16 %v725_v13, %v725_v13 }
 0x2fe   :  { %v728_v15 = vpack.c.bf16 %v726_v14, %v726_v14 }
 0x300   :  { %896 = vmatprep.mubr.bf16.mxu1 %v728_v15 }
 0x301   :  { %897 = vmatmul.mubr.bf16.vlgmr.msra.gmra.mrb[4].mxu1 %v727_v16 }
 0x3d4   :  { %v1078_v18 = vpop.f32.mrb[4].mxu1 }
 0x3d5   :  { %v1079_v20 = vpop.f32.mrb[5].mxu1 }
 0x3d6   :  { %v1080_v21 = vadd.f32 %v1079_v20, %v1078_v18  ;;  %v1081_v22 = vpop.f32.mrb[6].mxu1 }
 0x3d7   :  { %v1082_v23 = vpop.f32.mrb[7].mxu1 }
 0x3d8   :  { %v899_v24 = vadd.f32 %v1080_v21, %v1045_v19 }
 0x3da   :  { %v904_v25 = vmax.f32 %v899_v24, 0.0 }
 0x3dc   :  { %v906_v26 = vpack.c.bf16 %v904_v25, %v904_v25 }
 0x3de   :  { %1087 = vmatpush3.bf16.xpose.msra.mxu0 %v906_v26 }
 0x3e5   :  { %1089 = vmatmul.mubr.bf16.vlgmr.msra.gmra.mrb[8].mxu0 %v905_v27 }
 0x4b8   :  { %v951_v30 = vpop.f32.mrb[8].mxu0 }
 0x4b9   :  { %v952_v31 = vadd.f32 %v951_v30, %v916_v29  ;;  %v1090_v32 = vpop.f32.mrb[9].mxu0 }
 0x4ba   :  { %v954_v33 = vpop.f32.mrb[10].mxu0 }
 0x4bb   :  { %v1091_v34 = vpop.f32.mrb[11].mxu0  ;;  %958 = vst.msk [vmem:[#allocation12] sm:$0x1] %vm957_vm2, %v952_v31 }
 0x4bc   :  { %1345 = shalt.err (!%p1342_p2)
}
 0x4bd   :  { %s1346_s30 = scalar_lea.hbm %s1590_s13, 16 }
 0x4be   :  { %p1347_p3 = scmp.ne.s32.totalorder %s1590_s13, %s1346_s30  ;;  %p1350_p4 = scmp.lt.u32.totalorder %s1346_s30, %s1590_s13 }
 0x4c0   :  { %p1352_p5 = pnand %p1350_p4, %p1347_p3 }
 0x4c2   :  { %1355 = shalt.err (!%p1352_p5)
}
 0x4c3   :  { %968 = dma.vmem_to_hbm [thread:$0]  %s966_s25, 16, %s1590_s13, [#allocation5]  }
 0x4c4   :  { %1362 = dma.done.wait [#allocation5], 16  }
 0x4c5   :  { %1363 = vsyncadd [#allocation5], 4294967280 }
 0x4c6   :  { %972 = vsyncpa [#allocation4], 1 }
 0x4c7   :  { %973 = vsyncpa [#allocation7], 1 }
 0x4c8   :  { %974 = vsyncpa [#allocation10], 1 }
 0x4c9   :  { %975 = vsyncpa [#allocation5], 1 }

</bundles_post_ra>
